<compile_context>
chip_gen: v6e
topology: v6e:2x2x1
jax: 0.10.0
libtpu: 0.0.40
codegen_flags: <defaults>
</compile_context>

<pallas_src>
import jax
import jax.numpy as jnp
import numpy as np
from jax import lax
from jax.experimental import pallas as pl
from jax.experimental.pallas import tpu as pltpu

_W_CHUNK_MAX = 256   # lane chunk bound: keeps the ~3 live (3*Cin, chunk) groups + RHS in vregs
_HALO_ROWS = 8       # sublane-aligned halo block (only 2 of its rows are actually consumed)


def _make_kernel(*, th, cout, wo, has_halo, flatten_out, w_chunk):
    """Build the per-(batch, row-tile) kernel.

    Refs per grid step:
      xa_ref: (Cin, TH, Wu)  padded source rows t*TH .. t*TH+TH-1        (multi-tile)
              (Cin, Hp, Wu)  all padded source rows                      (single-tile)
      xb_ref: (Cin, 8,  Wu)  next 8 padded rows; only rows 0,1 (the halo) are read
                             (absent in the single-tile variant)
      w_ref:  (2*Cout, 9*Cin) row-phase-combined taps; col=(d*3+kw)*Cin+ci, row=p*Cout+co
      b_ref:  (2*Cout, 1)     bias duplicated per phase
      o_ref:  (Cout, 2*TH*Wo) flattened row-major output slab, or (Cout, 2*TH, Wo)
    """
    n_chunks = -(-wo // w_chunk)
    if flatten_out:
        assert n_chunks == 1, "output flattening requires a single width chunk"

    def kernel(*refs):
        if has_halo:
            xa_ref, xb_ref, w_ref, b_ref, o_ref = refs
        else:
            xa_ref, w_ref, b_ref, o_ref = refs
            xb_ref = None

        lhs = w_ref[...]                              # (2*Cout, 9*Cin), hoisted / resident
        bias = b_ref[...].astype(jnp.float32)         # (2*Cout, 1), hoisted

        def load_piece(k, col, wc):
            # (Cin, wc) window of padded source row k; k/col/wc are static Python ints.
            if xb_ref is None or k < th:
                return xa_ref[:, k, col:col + wc]
            return xb_ref[:, k - th, col:col + wc]    # only k == th, th+1 ever reach here

        # Static unroll: n_chunks * th iterations (bounded by max_tile_rows in the
        # multi-tile path).
        for c in range(n_chunks):
            c0 = c * w_chunk
            wc = min(w_chunk, wo - c0)

            # Rolling memoized kw-shift groups: group(k) = concat_kw of the (Cin, wc)
            # windows of source row k -> (3*Cin, wc).  Each source row is shifted once
            # per chunk and reused by the (up to) 3 output row pairs that touch it.
            groups = {}

            def group(k):
                if k not in groups:
                    groups[k] = jnp.concatenate(
                        [load_piece(k, c0 + kw, wc) for kw in range(3)], axis=0)
                return groups[k]

            for rr in range(th):
                # One MXU call per output row pair: (2*Cout, 9*Cin) @ (9*Cin, wc).
                rhs = jnp.concatenate([group(rr + d) for d in range(3)], axis=0)
                res = jnp.dot(lhs, rhs, preferred_element_type=jnp.float32) + bias
                y_even = res[:cout].astype(o_ref.dtype)     # output row 2*rr
                y_odd = res[cout:].astype(o_ref.dtype)      # output row 2*rr + 1
                if flatten_out:
                    # Lane-dense store of the whole row pair (2*Wo contiguous lanes).
                    o_ref[:, pl.ds(2 * rr * wo, 2 * wo)] = jnp.concatenate(
                        [y_even, y_odd], axis=1)
                else:
                    o_ref[:, 2 * rr, c0:c0 + wc] = y_even
                    o_ref[:, 2 * rr + 1, c0:c0 + wc] = y_odd

    return kernel


def _vmem_capacity_bytes():
    try:
        return int(getattr(pltpu.get_tpu_info(), "vmem_capacity_bytes", 64 << 20))
    except Exception:
        return 64 << 20


def _step_bytes(C, th, Wu, Wo):
    # Double-buffered xa + halo + output slabs for one grid step (f32).
    return 2 * 4 * (C * th * Wu + C * _HALO_ROWS * Wu + C * 2 * th * Wo)


def _select_tile_rows(B, C, H, Wu, Wo, max_tile_rows, vmem_cap):
    """Largest sublane-aligned row tile dividing H that fits the VMEM budget, preferring
    >=4 total grid steps (>=2 per TensorCore on dual-core parts).  Returns None when H
    is not a multiple of 8 -> single-tile fallback."""
    cands = [d for d in range(8, min(H, max_tile_rows) + 1, 8) if H % d == 0]
    if not cands:
        return None
    budget = max(8 << 20, vmem_cap // 2)
    fitting = [d for d in cands if _step_bytes(C, d, Wu, Wo) <= budget] or [cands[0]]
    good = [d for d in fitting if B * (H // d) >= 4]
    return max(good) if good else min(fitting)


def upsample_forward(x_nchw, weight, bias, *, max_tile_rows=32):
    """Equivalent of Upsample.forward: nearest 2x upsample then 3x3 conv (padding=1).

    x_nchw: (B, C, H, W) float32;  weight: (C, C, 3, 3);  bias: (C,)
    returns (B, C, 2H, 2W) float32 in NCHW.
    """
    B, C, H, W = x_nchw.shape
    assert weight.shape == (C, C, 3, 3) and bias.shape == (C,)
    Ho, Wo = 2 * H, 2 * W

    # ---- wrapper-side prep (single fused XLA op: width nearest-2x + zero pad) ----------
    # TODO(synk): fold the width nearest-duplication (lane interleave) into the kernel
    # once a robust in-VMEM lane-interleave lowering is available; row upsample, all row
    # padding, the halo and the conv are already in-kernel.
    Wu = Wo + 2
    if Wu % 128 and Wu >= 512:            # lane-align long rows; skip when pad would dominate
        Wu = ((Wu + 127) // 128) * 128
    xw = jnp.repeat(x_nchw, 2, axis=3)                                  # (B, C, H, 2W)
    xw = jnp.pad(xw, ((0, 0), (0, 0), (1, _HALO_ROWS), (1, Wu - Wo - 1)))
    Hp = H + 1 + _HALO_ROWS               # row 0 = top pad, 1..H = data, rest = bottom pad

    # ---- row-phase combined taps: fold kh into 3 source rows per output-row phase -----
    #   p=0 (even out row): src row r-1 <- kh0      ; src row r   <- kh1+kh2
    #   p=1 (odd  out row): src row r   <- kh0+kh1  ; src row r+1 <- kh2
    R3 = jnp.array([[[1, 0, 0], [0, 1, 1], [0, 0, 0]],
                    [[0, 0, 0], [1, 1, 0], [0, 0, 1]]], dtype=weight.dtype)   # (p, d, kh)
    lhs = jnp.einsum('pdh,oihk->podki', R3, weight).reshape(2 * C, 9 * C)
    b2 = jnp.tile(bias, 2).reshape(2 * C, 1)

    # ---- tiling / VMEM sizing ----------------------------------------------------------
    vmem_cap = _vmem_capacity_bytes()
    TH = _select_tile_rows(B, C, H, Wu, Wo, max_tile_rows, vmem_cap)
    single_tile = TH is None
    w_chunk = min(Wo, _W_CHUNK_MAX)

    if single_tile:
        th = H
        flatten = Wo <= _W_CHUNK_MAX
        grid = (B,)
        in_specs = [
            pl.BlockSpec((None, C, Hp, Wu), lambda b: (b, 0, 0, 0)),
            pl.BlockSpec((2 * C, 9 * C), lambda b: (0, 0)),     # resident taps
            pl.BlockSpec((2 * C, 1), lambda b: (0, 0)),         # resident bias
        ]
        operands = (xw, lhs, b2)
        dims = ("parallel",)
        row_blocks = 1
        step_b = 2 * 4 * (C * Hp * Wu + C * Ho * Wo)
    else:
        th = TH
        flatten = (Wo <= _W_CHUNK_MAX) and (2 * TH * Wo) % 128 == 0
        grid = (B, H // TH)
        nblk = TH // 8
        in_specs = [
            pl.BlockSpec((None, C, TH, Wu), lambda b, t: (b, 0, t, 0)),
            # 8-row sublane-aligned halo block starting at padded row (t+1)*TH; only its
            # first two rows are read.  Bottom pad of _HALO_ROWS keeps the last tile's
            # halo DMA in bounds.
            pl.BlockSpec((None, C, _HALO_ROWS, Wu),
                         lambda b, t: (b, 0, (t + 1) * nblk, 0)),
            pl.BlockSpec((2 * C, 9 * C), lambda b, t: (0, 0)),  # resident taps
            pl.BlockSpec((2 * C, 1), lambda b, t: (0, 0)),      # resident bias
        ]
        operands = (xw, xw, lhs, b2)
        dims = ("parallel", "parallel")
        row_blocks = H // TH
        step_b = _step_bytes(C, TH, Wu, Wo)

    if flatten:
        out_shape = jax.ShapeDtypeStruct((B, C, Ho * Wo), x_nchw.dtype)
        if single_tile:
            out_spec = pl.BlockSpec((None, C, Ho * Wo), lambda b: (b, 0, 0))
        else:
            out_spec = pl.BlockSpec((None, C, 2 * TH * Wo), lambda b, t: (b, 0, t))
    else:
        out_shape = jax.ShapeDtypeStruct((B, C, Ho, Wo), x_nchw.dtype)
        if single_tile:
            out_spec = pl.BlockSpec((None, C, Ho, Wo), lambda b: (b, 0, 0, 0))
        else:
            out_spec = pl.BlockSpec((None, C, 2 * TH, Wo), lambda b, t: (b, 0, t, 0))

    vmem_limit = int(min(max(step_b + (8 << 20), 32 << 20), max(vmem_cap, 32 << 20)))

    kernel = _make_kernel(th=th, cout=C, wo=Wo, has_halo=not single_tile,
                          flatten_out=flatten, w_chunk=w_chunk)

    flops = 2 * 6 * C * C * B * Ho * Wo            # useful MACs: 6*Cin per output element
    bytes_accessed = 4 * (xw.size + B * row_blocks * C * _HALO_ROWS * Wu
                          + lhs.size + b2.size + B * C * Ho * Wo)

    out = pl.pallas_call(
        kernel,
        out_shape=out_shape,
        grid=grid,
        in_specs=in_specs,
        out_specs=out_spec,
        compiler_params=pltpu.CompilerParams(
            dimension_semantics=dims, vmem_limit_bytes=vmem_limit),
        cost_estimate=pl.CostEstimate(
            flops=flops, transcendentals=0, bytes_accessed=bytes_accessed),
    )(*operands)

    if flatten:
        out = out.reshape(B, C, Ho, Wo)
    return out


def reference_forward(x_nchw, weight, bias):
    """Pure-JAX reference (same semantics as the PyTorch module)."""
    up = jnp.repeat(jnp.repeat(x_nchw, 2, axis=2), 2, axis=3)
    y = lax.conv_general_dilated(
        up, weight, window_strides=(1, 1), padding=((1, 1), (1, 1)),
        dimension_numbers=("NCHW", "OIHW", "NCHW"))
    return y + bias[None, :, None, None]


if __name__ == "__main__":
    base_key = jax.random.PRNGKey(0)

    def run_case(case_idx, B, C, H, W):
        key = jax.random.fold_in(base_key, case_idx)
        kx, kw_, kb = jax.random.split(key, 3)
        fan_in = C * 3 * 3
        bound = 1.0 / np.sqrt(fan_in)
        x = jax.random.normal(kx, (B, C, H, W), dtype=jnp.float32)
        weight = jax.random.uniform(kw_, (C, C, 3, 3), minval=-bound, maxval=bound,
                                    dtype=jnp.float32)
        bias = jax.random.uniform(kb, (C,), minval=-bound, maxval=bound,
                                  dtype=jnp.float32)
        out = jax.jit(upsample_forward)(x, weight, bias)
        out = jax.block_until_ready(out)
        assert out.shape == (B, C, 2 * H, 2 * W), out.shape
        ref = reference_forward(x, weight, bias)
        np.testing.assert_allclose(np.asarray(out), np.asarray(ref),
                                   rtol=1e-4, atol=1e-4)

    # Primary shape from the module spec: multi-tile, shrunk halo, flattened output.
    run_case(0, B=2, C=4, H=16, W=16)
    # Multi-tile with a lane width that disables flattening (standard-layout stores).
    run_case(1, B=1, C=4, H=16, W=6)
    # Odd height -> single-tile fallback (no doubled padding, halo fully inside block).
    run_case(2, B=1, C=4, H=10, W=12)

    print("KERNEL_OK")
</pallas_src>

<mosaic_0001>
module attributes {stable_mosaic.version = 11 : i64} {
  func.func @kernel(%arg0: i32, %arg1: i32, %arg2: memref<1x4x8x34xf32, #tpu.memory_space<vmem>>, %arg3: memref<1x4x8x34xf32, #tpu.memory_space<vmem>>, %arg4: memref<8x36xf32, #tpu.memory_space<vmem>>, %arg5: memref<8x1xf32, #tpu.memory_space<vmem>>, %arg6: memref<1x4x512xf32, #tpu.memory_space<vmem>>) attributes {dimension_semantics = [#tpu.dimension_semantics<parallel>, #tpu.dimension_semantics<parallel>], iteration_bounds = array<i64: 2, 2>, scalar_prefetch = 0 : i64, scratch_operands = 0 : i64, tpu.core_type = #tpu.core_type<tc>, window_params = [{transform_indices = @transform_0, window_bounds = array<i64: 1, 4, 8, 34>}, {transform_indices = @transform_1, window_bounds = array<i64: 1, 4, 8, 34>}, {pipeline_mode = #tpu.pipeline_mode<synchronous>, transform_indices = @transform_2, window_bounds = array<i64: 8, 36>}, {pipeline_mode = #tpu.pipeline_mode<synchronous>, transform_indices = @transform_3, window_bounds = array<i64: 8, 1>}, {transform_indices = @transform_4, window_bounds = array<i64: 1, 4, 512>}]} {
    %c0 = arith.constant 0 : index
    %c0_0 = arith.constant 0 : index
    %0 = vector.load %arg4[%c0, %c0_0] : memref<8x36xf32, #tpu.memory_space<vmem>>, vector<8x36xf32>
    %c0_1 = arith.constant 0 : index
    %c0_2 = arith.constant 0 : index
    %1 = vector.load %arg5[%c0_1, %c0_2] : memref<8x1xf32, #tpu.memory_space<vmem>>, vector<8x1xf32>
    %c0_3 = arith.constant 0 : index
    %c0_4 = arith.constant 0 : index
    %c0_5 = arith.constant 0 : index
    %c0_6 = arith.constant 0 : index
    %2 = vector.load %arg2[%c0_3, %c0_4, %c0_5, %c0_6] : memref<1x4x8x34xf32, #tpu.memory_space<vmem>>, vector<1x4x1x32xf32>
    %3 = vector.shape_cast %2 : vector<1x4x1x32xf32> to vector<4x32xf32>
    %c0_7 = arith.constant 0 : index
    %c0_8 = arith.constant 0 : index
    %c0_9 = arith.constant 0 : index
    %c1 = arith.constant 1 : index
    %4 = vector.load %arg2[%c0_7, %c0_8, %c0_9, %c1] : memref<1x4x8x34xf32, #tpu.memory_space<vmem>>, vector<1x4x1x32xf32>
    %5 = vector.shape_cast %4 : vector<1x4x1x32xf32> to vector<4x32xf32>
    %c0_10 = arith.constant 0 : index
    %c0_11 = arith.constant 0 : index
    %c0_12 = arith.constant 0 : index
    %c2 = arith.constant 2 : index
    %6 = vector.load %arg2[%c0_10, %c0_11, %c0_12, %c2] : memref<1x4x8x34xf32, #tpu.memory_space<vmem>>, vector<1x4x1x32xf32>
    %7 = vector.shape_cast %6 : vector<1x4x1x32xf32> to vector<4x32xf32>
    %8 = tpu.concatenate %3, %5, %7 in 0 : vector<4x32xf32>, vector<4x32xf32>, vector<4x32xf32> -> vector<12x32xf32>
    %c0_13 = arith.constant 0 : index
    %c0_14 = arith.constant 0 : index
    %c1_15 = arith.constant 1 : index
    %c0_16 = arith.constant 0 : index
    %9 = vector.load %arg2[%c0_13, %c0_14, %c1_15, %c0_16] : memref<1x4x8x34xf32, #tpu.memory_space<vmem>>, vector<1x4x1x32xf32>
    %10 = vector.shape_cast %9 : vector<1x4x1x32xf32> to vector<4x32xf32>
    %c0_17 = arith.constant 0 : index
    %c0_18 = arith.constant 0 : index
    %c1_19 = arith.constant 1 : index
    %c1_20 = arith.constant 1 : index
    %11 = vector.load %arg2[%c0_17, %c0_18, %c1_19, %c1_20] : memref<1x4x8x34xf32, #tpu.memory_space<vmem>>, vector<1x4x1x32xf32>
    %12 = vector.shape_cast %11 : vector<1x4x1x32xf32> to vector<4x32xf32>
    %c0_21 = arith.constant 0 : index
    %c0_22 = arith.constant 0 : index
    %c1_23 = arith.constant 1 : index
    %c2_24 = arith.constant 2 : index
    %13 = vector.load %arg2[%c0_21, %c0_22, %c1_23, %c2_24] : memref<1x4x8x34xf32, #tpu.memory_space<vmem>>, vector<1x4x1x32xf32>
    %14 = vector.shape_cast %13 : vector<1x4x1x32xf32> to vector<4x32xf32>
    %15 = tpu.concatenate %10, %12, %14 in 0 : vector<4x32xf32>, vector<4x32xf32>, vector<4x32xf32> -> vector<12x32xf32>
    %c0_25 = arith.constant 0 : index
    %c0_26 = arith.constant 0 : index
    %c2_27 = arith.constant 2 : index
    %c0_28 = arith.constant 0 : index
    %16 = vector.load %arg2[%c0_25, %c0_26, %c2_27, %c0_28] : memref<1x4x8x34xf32, #tpu.memory_space<vmem>>, vector<1x4x1x32xf32>
    %17 = vector.shape_cast %16 : vector<1x4x1x32xf32> to vector<4x32xf32>
    %c0_29 = arith.constant 0 : index
    %c0_30 = arith.constant 0 : index
    %c2_31 = arith.constant 2 : index
    %c1_32 = arith.constant 1 : index
    %18 = vector.load %arg2[%c0_29, %c0_30, %c2_31, %c1_32] : memref<1x4x8x34xf32, #tpu.memory_space<vmem>>, vector<1x4x1x32xf32>
    %19 = vector.shape_cast %18 : vector<1x4x1x32xf32> to vector<4x32xf32>
    %c0_33 = arith.constant 0 : index
    %c0_34 = arith.constant 0 : index
    %c2_35 = arith.constant 2 : index
    %c2_36 = arith.constant 2 : index
    %20 = vector.load %arg2[%c0_33, %c0_34, %c2_35, %c2_36] : memref<1x4x8x34xf32, #tpu.memory_space<vmem>>, vector<1x4x1x32xf32>
    %21 = vector.shape_cast %20 : vector<1x4x1x32xf32> to vector<4x32xf32>
    %22 = tpu.concatenate %17, %19, %21 in 0 : vector<4x32xf32>, vector<4x32xf32>, vector<4x32xf32> -> vector<12x32xf32>
    %23 = tpu.concatenate %8, %15, %22 in 0 : vector<12x32xf32>, vector<12x32xf32>, vector<12x32xf32> -> vector<36x32xf32>
    %cst = arith.constant dense<0.000000e+00> : vector<8x32xf32>
    %24 = tpu.matmul %0, %23, %cst {dimension_numbers = #tpu.dot_dimension_numbers<[1], [0], [0], [1], [0, 0, 1, 1], [], []>} : vector<8x36xf32>, vector<36x32xf32>, vector<8x32xf32> -> vector<8x32xf32>
    %25 = vector.broadcast %1 : vector<8x1xf32> to vector<8x32xf32>
    %26 = arith.addf %24, %25 : vector<8x32xf32>
    %27 = vector.extract_strided_slice %26 {offsets = [0, 0], sizes = [4, 32], strides = [1, 1]} : vector<8x32xf32> to vector<4x32xf32>
    %28 = vector.extract_strided_slice %26 {offsets = [4, 0], sizes = [4, 32], strides = [1, 1]} : vector<8x32xf32> to vector<4x32xf32>
    %29 = tpu.concatenate %27, %28 in 1 : vector<4x32xf32>, vector<4x32xf32> -> vector<4x64xf32>
    %c0_37 = arith.constant 0 : index
    %c0_38 = arith.constant 0 : index
    %c0_39 = arith.constant 0 : index
    %30 = vector.load %arg6[%c0_37, %c0_38, %c0_39] : memref<1x4x512xf32, #tpu.memory_space<vmem>>, vector<1x4x64xf32>
    %31 = vector.shape_cast %30 : vector<1x4x64xf32> to vector<4x64xf32>
    %32 = vector.shape_cast %29 : vector<4x64xf32> to vector<1x4x64xf32>
    tpu.vector_store %arg6[%c0_37, %c0_38, %c0_39], %32 {strides = array<i32>} : memref<1x4x512xf32, #tpu.memory_space<vmem>>, vector<1x4x64xf32>,
    %c0_40 = arith.constant 0 : index
    %c0_41 = arith.constant 0 : index
    %c3 = arith.constant 3 : index
    %c0_42 = arith.constant 0 : index
    %33 = vector.load %arg2[%c0_40, %c0_41, %c3, %c0_42] : memref<1x4x8x34xf32, #tpu.memory_space<vmem>>, vector<1x4x1x32xf32>
    %34 = vector.shape_cast %33 : vector<1x4x1x32xf32> to vector<4x32xf32>
    %c0_43 = arith.constant 0 : index
    %c0_44 = arith.constant 0 : index
    %c3_45 = arith.constant 3 : index
    %c1_46 = arith.constant 1 : index
    %35 = vector.load %arg2[%c0_43, %c0_44, %c3_45, %c1_46] : memref<1x4x8x34xf32, #tpu.memory_space<vmem>>, vector<1x4x1x32xf32>
    %36 = vector.shape_cast %35 : vector<1x4x1x32xf32> to vector<4x32xf32>
    %c0_47 = arith.constant 0 : index
    %c0_48 = arith.constant 0 : index
    %c3_49 = arith.constant 3 : index
    %c2_50 = arith.constant 2 : index
    %37 = vector.load %arg2[%c0_47, %c0_48, %c3_49, %c2_50] : memref<1x4x8x34xf32, #tpu.memory_space<vmem>>, vector<1x4x1x32xf32>
    %38 = vector.shape_cast %37 : vector<1x4x1x32xf32> to vector<4x32xf32>
    %39 = tpu.concatenate %34, %36, %38 in 0 : vector<4x32xf32>, vector<4x32xf32>, vector<4x32xf32> -> vector<12x32xf32>
    %40 = tpu.concatenate %15, %22, %39 in 0 : vector<12x32xf32>, vector<12x32xf32>, vector<12x32xf32> -> vector<36x32xf32>
    %cst_51 = arith.constant dense<0.000000e+00> : vector<8x32xf32>
    %41 = tpu.matmul %0, %40, %cst_51 {dimension_numbers = #tpu.dot_dimension_numbers<[1], [0], [0], [1], [0, 0, 1, 1], [], []>} : vector<8x36xf32>, vector<36x32xf32>, vector<8x32xf32> -> vector<8x32xf32>
    %42 = vector.broadcast %1 : vector<8x1xf32> to vector<8x32xf32>
    %43 = arith.addf %41, %42 : vector<8x32xf32>
    %44 = vector.extract_strided_slice %43 {offsets = [0, 0], sizes = [4, 32], strides = [1, 1]} : vector<8x32xf32> to vector<4x32xf32>
    %45 = vector.extract_strided_slice %43 {offsets = [4, 0], sizes = [4, 32], strides = [1, 1]} : vector<8x32xf32> to vector<4x32xf32>
    %46 = tpu.concatenate %44, %45 in 1 : vector<4x32xf32>, vector<4x32xf32> -> vector<4x64xf32>
    %c0_52 = arith.constant 0 : index
    %c0_53 = arith.constant 0 : index
    %c64 = arith.constant 64 : index
    %47 = vector.load %arg6[%c0_52, %c0_53, %c64] : memref<1x4x512xf32, #tpu.memory_space<vmem>>, vector<1x4x64xf32>
    %48 = vector.shape_cast %47 : vector<1x4x64xf32> to vector<4x64xf32>
    %49 = vector.shape_cast %46 : vector<4x64xf32> to vector<1x4x64xf32>
    tpu.vector_store %arg6[%c0_52, %c0_53, %c64], %49 {strides = array<i32>} : memref<1x4x512xf32, #tpu.memory_space<vmem>>, vector<1x4x64xf32>,
    %c0_54 = arith.constant 0 : index
    %c0_55 = arith.constant 0 : index
    %c4 = arith.constant 4 : index
    %c0_56 = arith.constant 0 : index
    %50 = vector.load %arg2[%c0_54, %c0_55, %c4, %c0_56] : memref<1x4x8x34xf32, #tpu.memory_space<vmem>>, vector<1x4x1x32xf32>
    %51 = vector.shape_cast %50 : vector<1x4x1x32xf32> to vector<4x32xf32>
    %c0_57 = arith.constant 0 : index
    %c0_58 = arith.constant 0 : index
    %c4_59 = arith.constant 4 : index
    %c1_60 = arith.constant 1 : index
    %52 = vector.load %arg2[%c0_57, %c0_58, %c4_59, %c1_60] : memref<1x4x8x34xf32, #tpu.memory_space<vmem>>, vector<1x4x1x32xf32>
    %53 = vector.shape_cast %52 : vector<1x4x1x32xf32> to vector<4x32xf32>
    %c0_61 = arith.constant 0 : index
    %c0_62 = arith.constant 0 : index
    %c4_63 = arith.constant 4 : index
    %c2_64 = arith.constant 2 : index
    %54 = vector.load %arg2[%c0_61, %c0_62, %c4_63, %c2_64] : memref<1x4x8x34xf32, #tpu.memory_space<vmem>>, vector<1x4x1x32xf32>
    %55 = vector.shape_cast %54 : vector<1x4x1x32xf32> to vector<4x32xf32>
    %56 = tpu.concatenate %51, %53, %55 in 0 : vector<4x32xf32>, vector<4x32xf32>, vector<4x32xf32> -> vector<12x32xf32>
    %57 = tpu.concatenate %22, %39, %56 in 0 : vector<12x32xf32>, vector<12x32xf32>, vector<12x32xf32> -> vector<36x32xf32>
    %cst_65 = arith.constant dense<0.000000e+00> : vector<8x32xf32>
    %58 = tpu.matmul %0, %57, %cst_65 {dimension_numbers = #tpu.dot_dimension_numbers<[1], [0], [0], [1], [0, 0, 1, 1], [], []>} : vector<8x36xf32>, vector<36x32xf32>, vector<8x32xf32> -> vector<8x32xf32>
    %59 = vector.broadcast %1 : vector<8x1xf32> to vector<8x32xf32>
    %60 = arith.addf %58, %59 : vector<8x32xf32>
    %61 = vector.extract_strided_slice %60 {offsets = [0, 0], sizes = [4, 32], strides = [1, 1]} : vector<8x32xf32> to vector<4x32xf32>
    %62 = vector.extract_strided_slice %60 {offsets = [4, 0], sizes = [4, 32], strides = [1, 1]} : vector<8x32xf32> to vector<4x32xf32>
    %63 = tpu.concatenate %61, %62 in 1 : vector<4x32xf32>, vector<4x32xf32> -> vector<4x64xf32>
    %c0_66 = arith.constant 0 : index
    %c0_67 = arith.constant 0 : index
    %c128 = arith.constant 128 : index
    %64 = vector.load %arg6[%c0_66, %c0_67, %c128] : memref<1x4x512xf32, #tpu.memory_space<vmem>>, vector<1x4x64xf32>
    %65 = vector.shape_cast %64 : vector<1x4x64xf32> to vector<4x64xf32>
    %66 = vector.shape_cast %63 : vector<4x64xf32> to vector<1x4x64xf32>
    tpu.vector_store %arg6[%c0_66, %c0_67, %c128], %66 {strides = array<i32>} : memref<1x4x512xf32, #tpu.memory_space<vmem>>, vector<1x4x64xf32>,
    %c0_68 = arith.constant 0 : index
    %c0_69 = arith.constant 0 : index
    %c5 = arith.constant 5 : index
    %c0_70 = arith.constant 0 : index
    %67 = vector.load %arg2[%c0_68, %c0_69, %c5, %c0_70] : memref<1x4x8x34xf32, #tpu.memory_space<vmem>>, vector<1x4x1x32xf32>
    %68 = vector.shape_cast %67 : vector<1x4x1x32xf32> to vector<4x32xf32>
    %c0_71 = arith.constant 0 : index
    %c0_72 = arith.constant 0 : index
    %c5_73 = arith.constant 5 : index
    %c1_74 = arith.constant 1 : index
    %69 = vector.load %arg2[%c0_71, %c0_72, %c5_73, %c1_74] : memref<1x4x8x34xf32, #tpu.memory_space<vmem>>, vector<1x4x1x32xf32>
    %70 = vector.shape_cast %69 : vector<1x4x1x32xf32> to vector<4x32xf32>
    %c0_75 = arith.constant 0 : index
    %c0_76 = arith.constant 0 : index
    %c5_77 = arith.constant 5 : index
    %c2_78 = arith.constant 2 : index
    %71 = vector.load %arg2[%c0_75, %c0_76, %c5_77, %c2_78] : memref<1x4x8x34xf32, #tpu.memory_space<vmem>>, vector<1x4x1x32xf32>
    %72 = vector.shape_cast %71 : vector<1x4x1x32xf32> to vector<4x32xf32>
    %73 = tpu.concatenate %68, %70, %72 in 0 : vector<4x32xf32>, vector<4x32xf32>, vector<4x32xf32> -> vector<12x32xf32>
    %74 = tpu.concatenate %39, %56, %73 in 0 : vector<12x32xf32>, vector<12x32xf32>, vector<12x32xf32> -> vector<36x32xf32>
    %cst_79 = arith.constant dense<0.000000e+00> : vector<8x32xf32>
    %75 = tpu.matmul %0, %74, %cst_79 {dimension_numbers = #tpu.dot_dimension_numbers<[1], [0], [0], [1], [0, 0, 1, 1], [], []>} : vector<8x36xf32>, vector<36x32xf32>, vector<8x32xf32> -> vector<8x32xf32>
    %76 = vector.broadcast %1 : vector<8x1xf32> to vector<8x32xf32>
    %77 = arith.addf %75, %76 : vector<8x32xf32>
    %78 = vector.extract_strided_slice %77 {offsets = [0, 0], sizes = [4, 32], strides = [1, 1]} : vector<8x32xf32> to vector<4x32xf32>
    %79 = vector.extract_strided_slice %77 {offsets = [4, 0], sizes = [4, 32], strides = [1, 1]} : vector<8x32xf32> to vector<4x32xf32>
    %80 = tpu.concatenate %78, %79 in 1 : vector<4x32xf32>, vector<4x32xf32> -> vector<4x64xf32>
    %c0_80 = arith.constant 0 : index
    %c0_81 = arith.constant 0 : index
    %c192 = arith.constant 192 : index
    %81 = vector.load %arg6[%c0_80, %c0_81, %c192] : memref<1x4x512xf32, #tpu.memory_space<vmem>>, vector<1x4x64xf32>
    %82 = vector.shape_cast %81 : vector<1x4x64xf32> to vector<4x64xf32>
    %83 = vector.shape_cast %80 : vector<4x64xf32> to vector<1x4x64xf32>
    tpu.vector_store %arg6[%c0_80, %c0_81, %c192], %83 {strides = array<i32>} : memref<1x4x512xf32, #tpu.memory_space<vmem>>, vector<1x4x64xf32>,
    %c0_82 = arith.constant 0 : index
    %c0_83 = arith.constant 0 : index
    %c6 = arith.constant 6 : index
    %c0_84 = arith.constant 0 : index
    %84 = vector.load %arg2[%c0_82, %c0_83, %c6, %c0_84] : memref<1x4x8x34xf32, #tpu.memory_space<vmem>>, vector<1x4x1x32xf32>
    %85 = vector.shape_cast %84 : vector<1x4x1x32xf32> to vector<4x32xf32>
    %c0_85 = arith.constant 0 : index
    %c0_86 = arith.constant 0 : index
    %c6_87 = arith.constant 6 : index
    %c1_88 = arith.constant 1 : index
    %86 = vector.load %arg2[%c0_85, %c0_86, %c6_87, %c1_88] : memref<1x4x8x34xf32, #tpu.memory_space<vmem>>, vector<1x4x1x32xf32>
    %87 = vector.shape_cast %86 : vector<1x4x1x32xf32> to vector<4x32xf32>
    %c0_89 = arith.constant 0 : index
    %c0_90 = arith.constant 0 : index
    %c6_91 = arith.constant 6 : index
    %c2_92 = arith.constant 2 : index
    %88 = vector.load %arg2[%c0_89, %c0_90, %c6_91, %c2_92] : memref<1x4x8x34xf32, #tpu.memory_space<vmem>>, vector<1x4x1x32xf32>
    %89 = vector.shape_cast %88 : vector<1x4x1x32xf32> to vector<4x32xf32>
    %90 = tpu.concatenate %85, %87, %89 in 0 : vector<4x32xf32>, vector<4x32xf32>, vector<4x32xf32> -> vector<12x32xf32>
    %91 = tpu.concatenate %56, %73, %90 in 0 : vector<12x32xf32>, vector<12x32xf32>, vector<12x32xf32> -> vector<36x32xf32>
    %cst_93 = arith.constant dense<0.000000e+00> : vector<8x32xf32>
    %92 = tpu.matmul %0, %91, %cst_93 {dimension_numbers = #tpu.dot_dimension_numbers<[1], [0], [0], [1], [0, 0, 1, 1], [], []>} : vector<8x36xf32>, vector<36x32xf32>, vector<8x32xf32> -> vector<8x32xf32>
    %93 = vector.broadcast %1 : vector<8x1xf32> to vector<8x32xf32>
    %94 = arith.addf %92, %93 : vector<8x32xf32>
    %95 = vector.extract_strided_slice %94 {offsets = [0, 0], sizes = [4, 32], strides = [1, 1]} : vector<8x32xf32> to vector<4x32xf32>
    %96 = vector.extract_strided_slice %94 {offsets = [4, 0], sizes = [4, 32], strides = [1, 1]} : vector<8x32xf32> to vector<4x32xf32>
    %97 = tpu.concatenate %95, %96 in 1 : vector<4x32xf32>, vector<4x32xf32> -> vector<4x64xf32>
    %c0_94 = arith.constant 0 : index
    %c0_95 = arith.constant 0 : index
    %c256 = arith.constant 256 : index
    %98 = vector.load %arg6[%c0_94, %c0_95, %c256] : memref<1x4x512xf32, #tpu.memory_space<vmem>>, vector<1x4x64xf32>
    %99 = vector.shape_cast %98 : vector<1x4x64xf32> to vector<4x64xf32>
    %100 = vector.shape_cast %97 : vector<4x64xf32> to vector<1x4x64xf32>
    tpu.vector_store %arg6[%c0_94, %c0_95, %c256], %100 {strides = array<i32>} : memref<1x4x512xf32, #tpu.memory_space<vmem>>, vector<1x4x64xf32>,
    %c0_96 = arith.constant 0 : index
    %c0_97 = arith.constant 0 : index
    %c7 = arith.constant 7 : index
    %c0_98 = arith.constant 0 : index
    %101 = vector.load %arg2[%c0_96, %c0_97, %c7, %c0_98] : memref<1x4x8x34xf32, #tpu.memory_space<vmem>>, vector<1x4x1x32xf32>
    %102 = vector.shape_cast %101 : vector<1x4x1x32xf32> to vector<4x32xf32>
    %c0_99 = arith.constant 0 : index
    %c0_100 = arith.constant 0 : index
    %c7_101 = arith.constant 7 : index
    %c1_102 = arith.constant 1 : index
    %103 = vector.load %arg2[%c0_99, %c0_100, %c7_101, %c1_102] : memref<1x4x8x34xf32, #tpu.memory_space<vmem>>, vector<1x4x1x32xf32>
    %104 = vector.shape_cast %103 : vector<1x4x1x32xf32> to vector<4x32xf32>
    %c0_103 = arith.constant 0 : index
    %c0_104 = arith.constant 0 : index
    %c7_105 = arith.constant 7 : index
    %c2_106 = arith.constant 2 : index
    %105 = vector.load %arg2[%c0_103, %c0_104, %c7_105, %c2_106] : memref<1x4x8x34xf32, #tpu.memory_space<vmem>>, vector<1x4x1x32xf32>
    %106 = vector.shape_cast %105 : vector<1x4x1x32xf32> to vector<4x32xf32>
    %107 = tpu.concatenate %102, %104, %106 in 0 : vector<4x32xf32>, vector<4x32xf32>, vector<4x32xf32> -> vector<12x32xf32>
    %108 = tpu.concatenate %73, %90, %107 in 0 : vector<12x32xf32>, vector<12x32xf32>, vector<12x32xf32> -> vector<36x32xf32>
    %cst_107 = arith.constant dense<0.000000e+00> : vector<8x32xf32>
    %109 = tpu.matmul %0, %108, %cst_107 {dimension_numbers = #tpu.dot_dimension_numbers<[1], [0], [0], [1], [0, 0, 1, 1], [], []>} : vector<8x36xf32>, vector<36x32xf32>, vector<8x32xf32> -> vector<8x32xf32>
    %110 = vector.broadcast %1 : vector<8x1xf32> to vector<8x32xf32>
    %111 = arith.addf %109, %110 : vector<8x32xf32>
    %112 = vector.extract_strided_slice %111 {offsets = [0, 0], sizes = [4, 32], strides = [1, 1]} : vector<8x32xf32> to vector<4x32xf32>
    %113 = vector.extract_strided_slice %111 {offsets = [4, 0], sizes = [4, 32], strides = [1, 1]} : vector<8x32xf32> to vector<4x32xf32>
    %114 = tpu.concatenate %112, %113 in 1 : vector<4x32xf32>, vector<4x32xf32> -> vector<4x64xf32>
    %c0_108 = arith.constant 0 : index
    %c0_109 = arith.constant 0 : index
    %c320 = arith.constant 320 : index
    %115 = vector.load %arg6[%c0_108, %c0_109, %c320] : memref<1x4x512xf32, #tpu.memory_space<vmem>>, vector<1x4x64xf32>
    %116 = vector.shape_cast %115 : vector<1x4x64xf32> to vector<4x64xf32>
    %117 = vector.shape_cast %114 : vector<4x64xf32> to vector<1x4x64xf32>
    tpu.vector_store %arg6[%c0_108, %c0_109, %c320], %117 {strides = array<i32>} : memref<1x4x512xf32, #tpu.memory_space<vmem>>, vector<1x4x64xf32>,
    %c0_110 = arith.constant 0 : index
    %c0_111 = arith.constant 0 : index
    %c0_112 = arith.constant 0 : index
    %c0_113 = arith.constant 0 : index
    %118 = vector.load %arg3[%c0_110, %c0_111, %c0_112, %c0_113] : memref<1x4x8x34xf32, #tpu.memory_space<vmem>>, vector<1x4x1x32xf32>
    %119 = vector.shape_cast %118 : vector<1x4x1x32xf32> to vector<4x32xf32>
    %c0_114 = arith.constant 0 : index
    %c0_115 = arith.constant 0 : index
    %c0_116 = arith.constant 0 : index
    %c1_117 = arith.constant 1 : index
    %120 = vector.load %arg3[%c0_114, %c0_115, %c0_116, %c1_117] : memref<1x4x8x34xf32, #tpu.memory_space<vmem>>, vector<1x4x1x32xf32>
    %121 = vector.shape_cast %120 : vector<1x4x1x32xf32> to vector<4x32xf32>
    %c0_118 = arith.constant 0 : index
    %c0_119 = arith.constant 0 : index
    %c0_120 = arith.constant 0 : index
    %c2_121 = arith.constant 2 : index
    %122 = vector.load %arg3[%c0_118, %c0_119, %c0_120, %c2_121] : memref<1x4x8x34xf32, #tpu.memory_space<vmem>>, vector<1x4x1x32xf32>
    %123 = vector.shape_cast %122 : vector<1x4x1x32xf32> to vector<4x32xf32>
    %124 = tpu.concatenate %119, %121, %123 in 0 : vector<4x32xf32>, vector<4x32xf32>, vector<4x32xf32> -> vector<12x32xf32>
    %125 = tpu.concatenate %90, %107, %124 in 0 : vector<12x32xf32>, vector<12x32xf32>, vector<12x32xf32> -> vector<36x32xf32>
    %cst_122 = arith.constant dense<0.000000e+00> : vector<8x32xf32>
    %126 = tpu.matmul %0, %125, %cst_122 {dimension_numbers = #tpu.dot_dimension_numbers<[1], [0], [0], [1], [0, 0, 1, 1], [], []>} : vector<8x36xf32>, vector<36x32xf32>, vector<8x32xf32> -> vector<8x32xf32>
    %127 = vector.broadcast %1 : vector<8x1xf32> to vector<8x32xf32>
    %128 = arith.addf %126, %127 : vector<8x32xf32>
    %129 = vector.extract_strided_slice %128 {offsets = [0, 0], sizes = [4, 32], strides = [1, 1]} : vector<8x32xf32> to vector<4x32xf32>
    %130 = vector.extract_strided_slice %128 {offsets = [4, 0], sizes = [4, 32], strides = [1, 1]} : vector<8x32xf32> to vector<4x32xf32>
    %131 = tpu.concatenate %129, %130 in 1 : vector<4x32xf32>, vector<4x32xf32> -> vector<4x64xf32>
    %c0_123 = arith.constant 0 : index
    %c0_124 = arith.constant 0 : index
    %c384 = arith.constant 384 : index
    %132 = vector.load %arg6[%c0_123, %c0_124, %c384] : memref<1x4x512xf32, #tpu.memory_space<vmem>>, vector<1x4x64xf32>
    %133 = vector.shape_cast %132 : vector<1x4x64xf32> to vector<4x64xf32>
    %134 = vector.shape_cast %131 : vector<4x64xf32> to vector<1x4x64xf32>
    tpu.vector_store %arg6[%c0_123, %c0_124, %c384], %134 {strides = array<i32>} : memref<1x4x512xf32, #tpu.memory_space<vmem>>, vector<1x4x64xf32>,
    %c0_125 = arith.constant 0 : index
    %c0_126 = arith.constant 0 : index
    %c1_127 = arith.constant 1 : index
    %c0_128 = arith.constant 0 : index
    %135 = vector.load %arg3[%c0_125, %c0_126, %c1_127, %c0_128] : memref<1x4x8x34xf32, #tpu.memory_space<vmem>>, vector<1x4x1x32xf32>
    %136 = vector.shape_cast %135 : vector<1x4x1x32xf32> to vector<4x32xf32>
    %c0_129 = arith.constant 0 : index
    %c0_130 = arith.constant 0 : index
    %c1_131 = arith.constant 1 : index
    %c1_132 = arith.constant 1 : index
    %137 = vector.load %arg3[%c0_129, %c0_130, %c1_131, %c1_132] : memref<1x4x8x34xf32, #tpu.memory_space<vmem>>, vector<1x4x1x32xf32>
    %138 = vector.shape_cast %137 : vector<1x4x1x32xf32> to vector<4x32xf32>
    %c0_133 = arith.constant 0 : index
    %c0_134 = arith.constant 0 : index
    %c1_135 = arith.constant 1 : index
    %c2_136 = arith.constant 2 : index
    %139 = vector.load %arg3[%c0_133, %c0_134, %c1_135, %c2_136] : memref<1x4x8x34xf32, #tpu.memory_space<vmem>>, vector<1x4x1x32xf32>
    %140 = vector.shape_cast %139 : vector<1x4x1x32xf32> to vector<4x32xf32>
    %141 = tpu.concatenate %136, %138, %140 in 0 : vector<4x32xf32>, vector<4x32xf32>, vector<4x32xf32> -> vector<12x32xf32>
    %142 = tpu.concatenate %107, %124, %141 in 0 : vector<12x32xf32>, vector<12x32xf32>, vector<12x32xf32> -> vector<36x32xf32>
    %cst_137 = arith.constant dense<0.000000e+00> : vector<8x32xf32>
    %143 = tpu.matmul %0, %142, %cst_137 {dimension_numbers = #tpu.dot_dimension_numbers<[1], [0], [0], [1], [0, 0, 1, 1], [], []>} : vector<8x36xf32>, vector<36x32xf32>, vector<8x32xf32> -> vector<8x32xf32>
    %144 = vector.broadcast %1 : vector<8x1xf32> to vector<8x32xf32>
    %145 = arith.addf %143, %144 : vector<8x32xf32>
    %146 = vector.extract_strided_slice %145 {offsets = [0, 0], sizes = [4, 32], strides = [1, 1]} : vector<8x32xf32> to vector<4x32xf32>
    %147 = vector.extract_strided_slice %145 {offsets = [4, 0], sizes = [4, 32], strides = [1, 1]} : vector<8x32xf32> to vector<4x32xf32>
    %148 = tpu.concatenate %146, %147 in 1 : vector<4x32xf32>, vector<4x32xf32> -> vector<4x64xf32>
    %c0_138 = arith.constant 0 : index
    %c0_139 = arith.constant 0 : index
    %c448 = arith.constant 448 : index
    %149 = vector.load %arg6[%c0_138, %c0_139, %c448] : memref<1x4x512xf32, #tpu.memory_space<vmem>>, vector<1x4x64xf32>
    %150 = vector.shape_cast %149 : vector<1x4x64xf32> to vector<4x64xf32>
    %151 = vector.shape_cast %148 : vector<4x64xf32> to vector<1x4x64xf32>
    tpu.vector_store %arg6[%c0_138, %c0_139, %c448], %151 {strides = array<i32>} : memref<1x4x512xf32, #tpu.memory_space<vmem>>, vector<1x4x64xf32>,
    return
  }
  func.func @transform_0(%arg0: i32, %arg1: i32) -> (i32, i32, i32, i32) {
    %c0_i32 = arith.constant 0 : i32
    %c0_i32_0 = arith.constant 0 : i32
    %c0_i32_1 = arith.constant 0 : i32
    return %arg0, %c0_i32, %arg1, %c0_i32_0 : i32, i32, i32, i32
  }
  func.func @transform_1(%arg0: i32, %arg1: i32) -> (i32, i32, i32, i32) {
    %c1_i32 = arith.constant 1 : i32
    %0 = arith.addi %arg1, %c1_i32 : i32
    %c1_i32_0 = arith.constant 1 : i32
    %1 = arith.muli %0, %c1_i32_0 : i32
    %c0_i32 = arith.constant 0 : i32
    %c0_i32_1 = arith.constant 0 : i32
    %c0_i32_2 = arith.constant 0 : i32
    return %arg0, %c0_i32, %1, %c0_i32_1 : i32, i32, i32, i32
  }
  func.func @transform_2(%arg0: i32, %arg1: i32) -> (i32, i32) {
    %c0_i32 = arith.constant 0 : i32
    %c0_i32_0 = arith.constant 0 : i32
    %c0_i32_1 = arith.constant 0 : i32
    return %c0_i32, %c0_i32_0 : i32, i32
  }
  func.func @transform_3(%arg0: i32, %arg1: i32) -> (i32, i32) {
    %c0_i32 = arith.constant 0 : i32
    %c0_i32_0 = arith.constant 0 : i32
    %c0_i32_1 = arith.constant 0 : i32
    return %c0_i32, %c0_i32_0 : i32, i32
  }
  func.func @transform_4(%arg0: i32, %arg1: i32) -> (i32, i32, i32) {
    %c0_i32 = arith.constant 0 : i32
    %c0_i32_0 = arith.constant 0 : i32
    return %arg0, %c0_i32, %arg1 : i32, i32, i32
  }
}

</mosaic_0001>

<bundles_post_ra>
// kernel: tile.0
= control target key start
LH: loop header
LB: loop body
LE: loop exit
PB: predicated region body
PF: predicated region fallthrough
CT: control target
= control target key end

     0   :  { %s35_s8 = smov 125   ;;  %vm8_vm0 = vcmask 7168   ;;  %s36_s11 = smov 126   ;;  %s62_s0 = inlined_call_operand.vmem [shape: f32[2,4], index: 0, kind: input, shape index: {}]   ;;  %s63_s1 = inlined_call_operand.vmem [shape: f32[8,1], index: 1, kind: output, shape index: {}]  }
   0x1   :  { %v5_v0 = vld [vmem:[%s62_s0] sm:$0x3]  ;;  %s34_s0 = smov 127  }
   0x2   :  { %6 = vst [vmem:[#allocation0] sm:$0x3] %v5_v0 }
   0x9   :  { %v10_v1 = vld [vmem:[#allocation0] sm:$0x3]  }
   0xa   :  { %v22_v2 = vld [vmem:[#allocation0] sm:$0x3]   ;;  %11 = vrot.lane.b32.xlu0 %v10_v1, %s34_s0 }
   0xb   :  { %23 = vrot.lane.b32.xlu1 %v22_v2, %s35_s8  ;;  %v7_v3 = vld [vmem:[#allocation0] sm:$0x3]  }
   0xc   :  { %v16_v4 = vld [vmem:[#allocation0] sm:$0x3]   ;;  %9 = vst.msk [vmem:[%s63_s1] ss:$4 sm:$0x3] %vm8_vm0, %v7_v3  }
   0xe   :  { %17 = vrot.lane.b32.xlu0 %v16_v4, %s36_s11 }
  0x7c   :  { %v12_v5 = vpop.permute.xlu0 %11  }
  0x7d   :  { %v24_v6 = vpop.permute.xlu1 %23   ;;  %28 = vst.msk [vmem:[%s63_s1 + $0x1] ss:$4 sm:$0x3] %vm8_vm0, %v12_v5  }
  0x7e   :  { %30 = vst.msk [vmem:[%s63_s1 + $0x3] ss:$4 sm:$0x3] %vm8_vm0, %v24_v6  }
  0x80   :  { %v18_v7 = vpop.permute.xlu0 %17  }
  0x81   :  { %29 = vst.msk [vmem:[%s63_s1 + $0x2] ss:$4 sm:$0x3] %vm8_vm0, %v18_v7  }

// kernel: tile.8
= control target key start
LH: loop header
LB: loop body
LE: loop exit
PB: predicated region body
PF: predicated region fallthrough
CT: control target
= control target key end

     0   :  { %s22_s0 = inlined_call_operand.vmem [shape: f32[4], index: 0, kind: input, shape index: {}]   ;;  %s23_s1 = inlined_call_operand.vmem [shape: f32[2,4], index: 1, kind: output, shape index: {}]  }
   0x1   :  { %v4_v0 = vld [vmem:[%s22_s0] ss:$0 sm:$0xff] }
   0x2   :  { %5 = vst [vmem:[%s23_s1] sm:$0x3] %v4_v0 }

// kernel: upsample_forward.1
= control target key start
LH: loop header
LB: loop body
LE: loop exit
PB: predicated region body
PF: predicated region fallthrough
CT: control target
= control target key end

     0   :  { %s1847_s15 = smov 0   ;;  %s1849_s16 = smov 0   ;;  %s2354_s0 = inlined_call_operand.vmem [shape: f32[2,4,25,34], index: 0, kind: input, shape index: {}, may-alias: {0,1}]   ;;  %s2355_s1 = inlined_call_operand.vmem [shape: f32[2,4,25,34], index: 1, kind: input, shape index: {}, may-alias: {0,1}]   ;;  %s2356_s2 = inlined_call_operand.vmem [shape: f32[8,36], index: 2, kind: input, shape index: {}]   ;;  %s2357_s3 = inlined_call_operand.vmem [shape: f32[8,1], index: 3, kind: input, shape index: {}]   ;;  %s2358_s4 = inlined_call_operand.vmem [shape: f32[2,4,1024], index: 4, kind: output, shape index: {}]  }
   0x1   :  { %s1851_s17 = smov 0   ;;  %s1853_s18 = smov 0  }
   0x2   :  { %s1855_s19 = smov 0   ;;  %s1857_s20 = smov 0  }
   0x3   :  { %s1859_s21 = smov 0   ;;  %s1861_s22 = smov 0  }
   0x4   :  { %s1863_s23 = smov 0  }
   0x5 LB: > { %s23_s24 = sadd.s32 1, %s1805_s21  ;;  %s26_s25 = sadd.s32 1, %s1809_s22  ;;  %s1813_s23 = sphi %s1863_s23, %s14_s23   ;;  %s1809_s22 = sphi %s1861_s22, %s2368_s22   ;;  %s1805_s21 = sphi %s1859_s21, %s2367_s21   ;;  %s1801_s20 = sphi %s1857_s20, %s2366_s20   ;;  %s1797_s19 = sphi %s1855_s19, %s2365_s19   ;;  %s1793_s18 = sphi %s1853_s18, %s2364_s18   ;;  %s1789_s17 = sphi %s1851_s17, %s2363_s17   ;;  %s1785_s16 = sphi %s1849_s16, %s2362_s16   ;;  %s1781_s15 = sphi %s1847_s15, %s2361_s15  }
   0x6   : > { %p24_p0 = scmp.ge.s32.totalorder %s23_s24, 2  ;;  %p42_p1 = scmp.ne.s32.totalorder %s1793_s18, %s1789_s17 }
   0x7   : > { %p43_p2 = scmp.eq.s32.totalorder %s1813_s23, 0  ;;  %s35_s5 = sadd.s32 1, %s1793_s18 }
   0x8   : > { %s1897_s26 = scalar_select %p24_p0, 0, %s23_s24  }
   0x9   : > { %s2370_s25 = smov (!%p24_p0, %s26_s25), %s1809_s22  ;;  %p1902_p3 = por %p43_p2, %p42_p1 }
   0xa   : > { %p28_p4 = scmp.ge.s32.totalorder %s2370_s25, 2  ;;  %s59_s28 = sadd.s32 1, %s1897_s26 }
   0xb   : > { %s31_s29 = ssub.s32 %s1805_s21, %s1897_s26  ;;  %s61_s30 = ssub.s32 %s23_s24, %s59_s28 }
   0xc   : > { %s2372_s25 = smov (%p28_p4, %s2370_s25), 0  ;;  %p72_p5 = scmp.ne.s32.totalorder %s1785_s16, %s1781_s15 }
   0xd   : > { %s30_s6 = ssub.s32 %s1809_s22, %s2372_s25  ;;  %s65_s7 = sadd.s32 1, %s1785_s16 }
   0xe   : > { %s32_s8 = sor.u32 %s31_s29, %s30_s6  ;;  %s62_s9 = sor.u32 %s61_s30, %s30_s6 }
   0xf   : > { %p33_p6 = scmp.eq.s32.totalorder %s32_s8, 0  ;;  %p63_p7 = scmp.eq.s32.totalorder %s62_s9, 0 }
  0x10   : > { %p1919_p8 = por %p72_p5, %p43_p2  ;;  %p1476_p9 = scmp.ge.s32.totalorder %s1813_s23, 4 }
  0x11   : > { %s1924_s11 = scalar_select %p33_p6, %s1793_s18, %s35_s5  }
  0x12   : > { %s1927_s12 = scalar_select %p63_p7, %s1785_s16, %s65_s7  }
  0x13   : > { %174 = sbr.rel (%p1476_p9) target bundleno = 44 (0x2c), region = 24 }
  0x18   : > { %177 = sbr.rel (!%p1902_p3) target bundleno = 34 (0x22), region = 28  ;;  %s179_s13 = sand.u32 (%p1902_p3), 1, %s1793_s18  }
  0x19   : > { %s1478_s14 = sshll.u32 (%p1902_p3), %s1809_s22, 4  ;;  %s1477_s24 = sshll.u32 (%p1902_p3), %s179_s13, 5 }
  0x1a   : > { %s183_s28 = sadd.s32 (%p1902_p3), %s1805_s21, %s1478_s14  ;;  %s181_s7 = scalar_lea.vmem (%p1902_p3), [#allocation2], %s1477_s24 }
  0x1b   : > { %s1479_s29 = sshll.u32 (%p1902_p3), %s183_s28, 3 }
  0x1c   : > { %s185_s5 = scalar_lea.vmem (%p1902_p3), %s2354_s0, %s1479_s29 }
  0x1d   : > { %v220_v0 = vld [vmem:[%s185_s5] sm:$0xff] }
  0x1e   : > { %v222_v1 = vld [vmem:[%s185_s5 + $0x20] sm:$0xff]  ;;  %221 = vst [vmem:[%s181_s7] sm:$0xff] %v220_v0 }
  0x1f   : > { %v224_v2 = vld [vmem:[%s185_s5 + $0x40] sm:$0xff]  ;;  %223 = vst [vmem:[%s181_s7 + $0x8] sm:$0xff] %v222_v1 }
  0x20   : > { %225 = vst [vmem:[%s181_s7 + $0x10] sm:$0xff] %v224_v2  ;;  %v226_v3 = vld [vmem:[%s185_s5 + $0x60] sm:$0xff] }
  0x21   : > { %227 = vst [vmem:[%s181_s7 + $0x18] sm:$0xff] %v226_v3 }
  0x22 PF: > { %233 = sbr.rel (!%p1919_p8) target bundleno = 44 (0x2c), region = 66  ;;  %s235_s27 = sand.u32 (%p1919_p8), 1, %s1785_s16  }
  0x23   : > { %s1481_s8 = sshll.u32 (%p1919_p8), %s1809_s22, 4  ;;  %s1480_s9 = sshll.u32 (%p1919_p8), %s235_s27, 5 }
  0x24   : > { %s1399_s13 = sadd.s32 (%p1919_p8), %s1805_s21, %s1481_s8  ;;  %s237_s30 = scalar_lea.vmem (%p1919_p8), [#allocation3], %s1480_s9 }
  0x25   : > { %s1482_s14 = sshll.u32 (%p1919_p8), %s1399_s13, 3 }
  0x26   : > { %s1401_s24 = scalar_lea.vmem (%p1919_p8), %s2355_s1, %s1482_s14 }
  0x27   : > { %v1483_v4 = vld [vmem:[%s1401_s24 + $0x8] sm:$0xff] }
  0x28   : > { %v1484_v5 = vld [vmem:[%s1401_s24 + $0x28] sm:$0xff]  ;;  %278 = vst [vmem:[%s237_s30] sm:$0xff] %v1483_v4 }
  0x29   : > { %v1485_v6 = vld [vmem:[%s1401_s24 + $0x48] sm:$0xff]  ;;  %280 = vst [vmem:[%s237_s30 + $0x8] sm:$0xff] %v1484_v5 }
  0x2a   : > { %282 = vst [vmem:[%s237_s30 + $0x10] sm:$0xff] %v1485_v6  ;;  %v1486_v7 = vld [vmem:[%s1401_s24 + $0x68] sm:$0xff] }
  0x2b   : > { %284 = vst [vmem:[%s237_s30 + $0x18] sm:$0xff] %v1486_v7 }
  0x2c PF: > { %p1487_p10 = scmp.ge.s32.totalorder %s1813_s23, 1  ;;  %p289_p11 = scmp.lt.s32.totalorder %s1813_s23, 5 }
  0x2e   : > { %p290_p12 = pnand %p1487_p10, %p289_p11 }
  0x2f   : > { %s296_s10 = sand.u32 (!%p290_p12), 1, %s1789_s17   ;;  %s1816_s17 = smov (!%p290_p12), 127  }
  0x30   : > { %293 = sbr.rel (%p290_p12) target bundleno = 649 (0x289), region = 104  ;;  %s1488_s6 = sshll.u32 (!%p290_p12), %s296_s10, 5 }
  0x31   : > { %s1951_s5 = scalar_lea.vmem (!%p290_p12), [#allocation2], %s1488_s6  ;;  %s1817_s7 = smov (!%p290_p12), 126  }
  0x32   : > { %s303_s27 = sand.u32 (!%p290_p12), 1, %s1781_s15   ;;  %s1820_s29 = smov (!%p290_p12), 32  }
  0x33   : > { %s2020_s15 = sshll.u32 (!%p290_p12), %s303_s27, 5  ;;  %s1821_s24 = smov (!%p290_p12), 64  }
  0x34   : > { %s305_s8 = scalar_lea.vmem (!%p290_p12), [#allocation3], %s2020_s15  ;;  %s1490_s30 = sshll.u32 (!%p290_p12), %s1797_s19, 2 }
  0x35   : > { %vm369_vm0 = vcmask 1045509   ;;  %vm372_vm1 = vcmask 1046534   ;;  %vm375_vm2 = vcmask 1047559   ;;  %vm358_vm3 = vcmask 1041409   ;;  %v414_v9 = vld [vmem:[%s1951_s5 + $0x2] sm:$0x1] }
  0x36   : > { %vm361_vm4 = vcmask 1042434   ;;  %vm364_vm5 = vcmask 1043459   ;;  %v1815_v8 = vmov 0.0   ;;  %v415_v10 = vld [vmem:[%s1951_s5 + $0xa] sm:$0x1]  ;;  %v429_v13 = vrot.slane %v414_v9, 4 }
  0x37   : > { %1559 = vmatprep.subr.mxu0 %v1815_v8  ;;  %1572 = vmatprep.subr.mxu1 %v1815_v8  ;;  %v416_v11 = vld [vmem:[%s1951_s5 + $0x12] sm:$0x1]  ;;  %v417_v12 = vld [vmem:[%s1951_s5 + $0x1a] sm:$0x1]  ;;  %v430_v14 = vrot.slane %v415_v10, 3  ;;  %v422_v16 = vrot.slane %v415_v10, 7 }
  0x38   : > { %v432_v15 = vrot.slane %v416_v11, 2  ;;  %v434_v17 = vrot.slane %v417_v12, 1  ;;  %v424_v18 = vrot.slane %v416_v11, 6  ;;  %v426_v19 = vrot.slane %v417_v12, 5  ;;  %v540_v20 = vld [vmem:[%s1951_s5 + $0x3] sm:$0x1] }
  0x39   : > { %v431_v21 = vsel %vm369_vm0, %v430_v14, %v429_v13  ;;  %v423_v22 = vsel %vm358_vm3, %v422_v16, %v414_v9  ;;  %v541_v23 = vld [vmem:[%s1951_s5 + $0xb] sm:$0x1]  ;;  %v542_v24 = vld [vmem:[%s1951_s5 + $0x13] sm:$0x1]  ;;  %v543_v25 = vld [vmem:[%s1951_s5 + $0x1b] sm:$0x1] }
  0x3a   : > { %v433_v26 = vsel %vm372_vm1, %v432_v15, %v431_v21  ;;  %v425_v27 = vsel %vm361_vm4, %v424_v18, %v423_v22  ;;  %v548_v28 = vrot.slane %v541_v23, 7  ;;  %v550_v29 = vrot.slane %v542_v24, 6  ;;  %v385_v30 = vld [vmem:[%s1951_s5 + $0x1] sm:$0x1]  ;;  %v386_v31 = vld [vmem:[%s1951_s5 + $0x9] sm:$0x1] }
  0x3b   : > { %v435_v32 = vsel %vm375_vm2, %v434_v17, %v433_v26  ;;  %v1969_v33 = vsel %vm364_vm5, %v426_v19, %v425_v27  ;;  %v552_v34 = vrot.slane %v543_v25, 5  ;;  %v555_v35 = vrot.slane %v540_v20, 4  ;;  %v387_v36 = vld [vmem:[%s1951_s5 + $0x11] sm:$0x1]  ;;  %v388_v37 = vld [vmem:[%s1951_s5 + $0x19] sm:$0x1] }
  0x3c   : > { %436 = vrot.lane.b32.xlu0 %v435_v32, %s1816_s17  ;;  %439 = vrot.lane.b32.xlu1 %v1969_v33, %s1817_s7  ;;  %v549_v38 = vsel %vm358_vm3, %v548_v28, %v540_v20  ;;  %v556_v39 = vrot.slane %v541_v23, 3  ;;  %v558_v40 = vrot.slane %v542_v24, 2  ;;  %v560_v41 = vrot.slane %v543_v25, 1  ;;  %v775_v46 = vld [vmem:[%s1951_s5 + $0x5] sm:$0x1]  ;;  %p338_p13 = scmp.lt.s32.totalorder %s1801_s20, 1 }
  0x3d   : > { %v551_v42 = vsel %vm361_vm4, %v550_v29, %v549_v38  ;;  %v400_v43 = vrot.slane %v385_v30, 4  ;;  %v401_v44 = vrot.slane %v386_v31, 3  ;;  %v403_v45 = vrot.slane %v387_v36, 2  ;;  %v776_v47 = vld [vmem:[%s1951_s5 + $0xd] sm:$0x1]  ;;  %p340_p0 = scmp.lt.s32.totalorder %s1490_s30, 7 }
  0x3e   : > { %v1981_v48 = vsel %vm364_vm5, %v552_v34, %v551_v42  ;;  %v557_v49 = vsel %vm369_vm0, %v556_v39, %v555_v35  ;;  %v405_v50 = vrot.slane %v388_v37, 1  ;;  %v393_v51 = vrot.slane %v386_v31, 7  ;;  %v777_v52 = vld [vmem:[%s1951_s5 + $0x15] sm:$0x1]  ;;  %v1986_v53 = vld [vmem:[%s1951_s5 + $0x1d] sm:$0x1] }
  0x3f   : > { %v559_v54 = vsel %vm372_vm1, %v558_v40, %v557_v49  ;;  %v402_v55 = vsel %vm369_vm0, %v401_v44, %v400_v43  ;;  %v395_v56 = vrot.slane %v387_v36, 6  ;;  %v397_v57 = vrot.slane %v388_v37, 5  ;;  %v660_v58 = vld [vmem:[%s1951_s5 + $0x4] sm:$0x1]  ;;  %v661_v59 = vld [vmem:[%s1951_s5 + $0xc] sm:$0x1] }
  0x40   : > { %565 = vrot.lane.b32.xlu0 %v1981_v48, %s1817_s7  ;;  %v561_v60 = vsel %vm375_vm2, %v560_v41, %v559_v54  ;;  %v404_v61 = vsel %vm372_vm1, %v403_v45, %v402_v55  ;;  %v394_v62 = vsel %vm358_vm3, %v393_v51, %v385_v30  ;;  %v783_v63 = vrot.slane %v776_v47, 7  ;;  %v662_v0 = vld [vmem:[%s1951_s5 + $0x14] sm:$0x1]  ;;  %v663_v1 = vld [vmem:[%s1951_s5 + $0x1c] sm:$0x1]  ;;  %s2374_s20 = smov (!%p338_p13, %s1801_s20), 1 }
  0x41   : > { %562 = vrot.lane.b32.xlu1 %v561_v60, %s1816_s17  ;;  %v406_v2 = vsel %vm375_vm2, %v405_v50, %v404_v61  ;;  %v396_v3 = vsel %vm361_vm4, %v395_v56, %v394_v62  ;;  %v785_v4 = vrot.slane %v777_v52, 6  ;;  %v787_v5 = vrot.slane %v1986_v53, 5  ;;  %v1010_v11 = vld [vmem:[%s1951_s5 + $0xf] sm:$0x1]  ;;  %v1011_v16 = vld [vmem:[%s1951_s5 + $0x17] sm:$0x1] }
  0x42   : > { %v2005_v6 = vsel %vm364_vm5, %v397_v57, %v396_v3  ;;  %v784_v7 = vsel %vm358_vm3, %v783_v63, %v775_v46  ;;  %v790_v9 = vrot.slane %v775_v46, 4  ;;  %v675_v10 = vrot.slane %v660_v58, 4  ;;  %v2018_v21 = vld [vmem:[%s1951_s5 + $0x1f] sm:$0x1]  ;;  %v1009_v26 = vld [vmem:[%s1951_s5 + $0x7] sm:$0x1] }
  0x43   : > { %v786_v12 = vsel %vm361_vm4, %v785_v4, %v784_v7  ;;  %v676_v13 = vrot.slane %v661_v59, 3  ;;  %v678_v14 = vrot.slane %v662_v0, 2  ;;  %v680_v15 = vrot.slane %v663_v1, 1  ;;  %v894_v31 = vld [vmem:[%s1951_s5 + $0x6] sm:$0x1]  ;;  %s2376_s30 = smov (!%p340_p0, %s1490_s30), 7 }
  0x44   : > { %410 = vrot.lane.b32.xlu0 %v2005_v6, %s1817_s7  ;;  %v2014_v17 = vsel %vm364_vm5, %v787_v5, %v786_v12  ;;  %v791_v18 = vrot.slane %v776_v47, 3  ;;  %v793_v19 = vrot.slane %v777_v52, 2  ;;  %v795_v20 = vrot.slane %v1986_v53, 1  ;;  %v895_v32 = vld [vmem:[%s1951_s5 + $0xe] sm:$0x1]  ;;  %s1491_s10 = sshll.u32 %s2374_s20, 3 }
  0x45   : > { %407 = vrot.lane.b32.xlu1 %v406_v2, %s1816_s17  ;;  %v677_v22 = vsel %vm369_vm0, %v676_v13, %v675_v10  ;;  %v668_v23 = vrot.slane %v661_v59, 7  ;;  %v670_v24 = vrot.slane %v662_v0, 6  ;;  %v672_v25 = vrot.slane %v663_v1, 5  ;;  %v896_v38 = vld [vmem:[%s1951_s5 + $0x16] sm:$0x1]  ;;  %s343_s6 = sadd.s32 %s1491_s10, %s2376_s30 }
  0x46   : > { %v679_v27 = vsel %vm372_vm1, %v678_v14, %v677_v22  ;;  %v792_v28 = vsel %vm369_vm0, %v791_v18, %v790_v9  ;;  %v1017_v29 = vrot.slane %v1010_v11, 7  ;;  %v1019_v30 = vrot.slane %v1011_v16, 6  ;;  %v897_v39 = vld [vmem:[%s1951_s5 + $0x1e] sm:$0x1]  ;;  %v1128_v52 = vld [vmem:[%s305_s8] sm:$0x1] }
  0x47   : > { %v681_v34 = vsel %vm375_vm2, %v680_v15, %v679_v27  ;;  %v794_v35 = vsel %vm372_vm1, %v793_v19, %v792_v28  ;;  %v669_v36 = vsel %vm358_vm3, %v668_v23, %v660_v58  ;;  %v1021_v37 = vrot.slane %v2018_v21, 5  ;;  %v1129_v57 = vld [vmem:[%s305_s8 + $0x8] sm:$0x1]  ;;  %v1130_v58 = vld [vmem:[%s305_s8 + $0x10] sm:$0x1] }
  0x48   : > { %682 = vrot.lane.b32.xlu0 %v681_v34, %s1816_s17  ;;  %v671_v40 = vsel %vm361_vm4, %v670_v24, %v669_v36  ;;  %v1018_v41 = vsel %vm358_vm3, %v1017_v29, %v1009_v26  ;;  %v1024_v42 = vrot.slane %v1009_v26, 4  ;;  %v909_v45 = vrot.slane %v894_v31, 4  ;;  %v1243_v63 = vld [vmem:[%s305_s8 + $0x9] sm:$0x1]  ;;  %v1244_v0 = vld [vmem:[%s305_s8 + $0x11] sm:$0x1] }
  0x49   : > { %800 = vrot.lane.b32.xlu1 %v2014_v17, %s1817_s7  ;;  %v2041_v43 = vsel %vm364_vm5, %v672_v25, %v671_v40  ;;  %v1020_v44 = vsel %vm361_vm4, %v1019_v30, %v1018_v41  ;;  %v910_v46 = vrot.slane %v895_v32, 3  ;;  %v796_v47 = vsel %vm375_vm2, %v795_v20, %v794_v35  ;;  %v1131_v9 = vld [vmem:[%s305_s8 + $0x18] sm:$0x1]  ;;  %v1242_v12 = vld [vmem:[%s305_s8 + $0x1] sm:$0x1] }
  0x4a   : > { %v912_v49 = vrot.slane %v896_v38, 2  ;;  %v914_v50 = vrot.slane %v897_v39, 1  ;;  %v1025_v51 = vrot.slane %v1010_v11, 3  ;;  %v2047_v53 = vsel %vm364_vm5, %v1021_v37, %v1020_v44  ;;  %v1245_v13 = vld [vmem:[%s305_s8 + $0x19] sm:$0x1] }
  0x4b   : > { %v911_v54 = vsel %vm369_vm0, %v910_v46, %v909_v45  ;;  %v1027_v55 = vrot.slane %v1011_v16, 2  ;;  %v902_v56 = vrot.slane %v895_v32, 7  ;;  %v1029_v61 = vrot.slane %v2018_v21, 1  ;;  %v350_v24 = vld [vmem:[%s1951_s5 + $0x8] sm:$0x1] }
  0x4c   : > { %685 = vrot.lane.b32.xlu0 %v2041_v43, %s1817_s7  ;;  %v913_v59 = vsel %vm372_vm1, %v912_v49, %v911_v54  ;;  %v1026_v60 = vsel %vm369_vm0, %v1025_v51, %v1024_v42  ;;  %v904_v62 = vrot.slane %v896_v38, 6  ;;  %v906_v3 = vrot.slane %v897_v39, 5  ;;  %v349_v29 = vld [vmem:[%s1951_s5] sm:$0x1]  ;;  %v351_v34 = vld [vmem:[%s1951_s5 + $0x10] sm:$0x1] }
  0x4d   : > { %797 = vrot.lane.b32.xlu1 %v796_v47, %s1816_s17  ;;  %v915_v1 = vsel %vm375_vm2, %v914_v50, %v913_v59  ;;  %v903_v2 = vsel %vm358_vm3, %v902_v56, %v894_v31  ;;  %v1143_v4 = vrot.slane %v1128_v52, 4  ;;  %v1028_v5 = vsel %vm372_vm1, %v1027_v55, %v1026_v60  ;;  %v352_v45 = vld [vmem:[%s1951_s5 + $0x18] sm:$0x1]  ;;  %s1492_s5 = sshll.u32 %s343_s6, 2 }
  0x4e   : > { %v905_v7 = vsel %vm361_vm4, %v904_v62, %v903_v2  ;;  %v1144_v10 = vrot.slane %v1129_v57, 3  ;;  %v1146_v11 = vrot.slane %v1130_v58, 2  ;;  %v1250_v14 = vrot.slane %v1243_v63, 7  ;;  %s345_s27 = scalar_lea.vmem %s2358_s4, %s1492_s5 }
  0x4f   : > { %v1252_v15 = vrot.slane %v1244_v0, 6  ;;  %v1257_v18 = vrot.slane %v1242_v12, 4  ;;  %v1136_v19 = vrot.slane %v1129_v57, 7  ;;  %v1030_v20 = vsel %vm375_vm2, %v1029_v61, %v1028_v5  ;;  %v348_v61 = vld [vmem:[%s2357_s3] sm:$0xff] }
  0x50   : > { %916 = vrot.lane.b32.xlu0 %v915_v1, %s1816_s17  ;;  %v1145_v16 = vsel %vm369_vm0, %v1144_v10, %v1143_v4  ;;  %v2066_v21 = vsel %vm364_vm5, %v906_v3, %v905_v7  ;;  %v1148_v22 = vrot.slane %v1131_v9, 1  ;;  %v1251_v23 = vsel %vm358_vm3, %v1250_v14, %v1242_v12  ;;  %v2149_v14 = vld [vmem:[%s2356_s2] sm:$0xff] }
  0x51   : > { %1034 = vrot.lane.b32.xlu1 %v2047_v53, %s1817_s7  ;;  %v1147_v25 = vsel %vm372_vm1, %v1146_v11, %v1145_v16  ;;  %v1254_v26 = vrot.slane %v1245_v13, 5  ;;  %v1138_v27 = vrot.slane %v1130_v58, 6  ;;  %v1258_v28 = vrot.slane %v1243_v63, 3 }
  0x52   : > { %v1253_v30 = vsel %vm361_vm4, %v1252_v15, %v1251_v23  ;;  %v1137_v31 = vsel %vm358_vm3, %v1136_v19, %v1128_v52  ;;  %v1260_v32 = vrot.slane %v1244_v0, 2  ;;  %v357_v36 = vrot.slane %v350_v24, 7 }
  0x53   : > { %v1259_v35 = vsel %vm369_vm0, %v1258_v28, %v1257_v18  ;;  %v1149_v37 = vsel %vm375_vm2, %v1148_v22, %v1147_v25  ;;  %v1140_v38 = vrot.slane %v1131_v9, 5  ;;  %v367_v39 = vrot.slane %v349_v29, 4 }
  0x54   : > { %919 = vrot.lane.b32.xlu0 %v2066_v21, %s1817_s7  ;;  %v368_v40 = vrot.slane %v350_v24, 3  ;;  %v2081_v41 = vsel %vm364_vm5, %v1254_v26, %v1253_v30  ;;  %v1139_v42 = vsel %vm361_vm4, %v1138_v27, %v1137_v31  ;;  %v1262_v44 = vrot.slane %v1245_v13, 1 }
  0x55   : > { %1031 = vrot.lane.b32.xlu1 %v1030_v20, %s1816_s17  ;;  %v360_v46 = vrot.slane %v351_v34, 6  ;;  %v1261_v47 = vsel %vm372_vm1, %v1260_v32, %v1259_v35  ;;  %v359_v49 = vsel %vm358_vm3, %v357_v36, %v349_v29  ;;  %v371_v50 = vrot.slane %v351_v34, 2 }
  0x56   : > { %v370_v51 = vsel %vm369_vm0, %v368_v40, %v367_v39  ;;  %vm1818_vm6 = vmmov 0   ;;  %v2094_v52 = vsel %vm364_vm5, %v1140_v38, %v1139_v42  ;;  %v363_v54 = vrot.slane %v352_v45, 5 }
  0x57   : > { %1582 = vmatprep.mubr.msk.f32.mxu1 %vm1818_vm6, %v1815_v8  ;;  %1569 = vmatprep.mubr.msk.f32.mxu0 %vm1818_vm6, %v1815_v8  ;;  %v1263_v55 = vsel %vm375_vm2, %v1262_v44, %v1261_v47  ;;  %v362_v56 = vsel %vm361_vm4, %v360_v46, %v359_v49  ;;  %v374_v57 = vrot.slane %v352_v45, 1  ;;  %v373_v58 = vsel %vm372_vm1, %v371_v50, %v370_v51 }
  0x58   : > { %1150 = vrot.lane.b32.xlu0 %v1149_v37, %s1816_s17  ;;  %v2105_v59 = vsel %vm364_vm5, %v363_v54, %v362_v56  ;;  %v1819_v62 = vmov 0   ;;  %vm383_vm7 = vcmask 1043456   ;;  %vm455_vm8 = vcmask 293888  }
  0x59   : > { %1267 = vrot.lane.b32.xlu1 %v2081_v41, %s1817_s7  ;;  %v376_v60 = vsel %vm375_vm2, %v374_v57, %v373_v58  ;;  %1742 = vset.pattern.permute.xlu0 %v1819_v62  ;;  %vm536_vm9 = vcmask 261120   ;;  %vm538_vm10 = vcmask 519168   ;;  %vm658_vm11 = vcmask 1043968  }
  0x5c   : > { %1153 = vrot.lane.b32.xlu0 %v2094_v52, %s1817_s7 }
  0x5d   : > { %1264 = vrot.lane.b32.xlu1 %v1263_v55, %s1816_s17 }
  0x60   : > { %380 = vrot.lane.b32.xlu0 %v2105_v59, %s1817_s7 }
  0x61   : > { %377 = vrot.lane.b32.xlu1 %v376_v60, %s1816_s17 }
  0x64   : > { %452 = vperm.xlu0 %1742, %v348_v61  }
  0xae   : > { %v437_v63 = vpop.permute.xlu0 %436  ;;  %v2114_v0 = vpop.permute.xlu1 %439 }
  0xaf   : > { %1560 = vmatpush3.msk.msra.mxu0 %vm383_vm7, %v2114_v0  ;;  %v2120_v1 = vsel %vm383_vm7, %v1969_v33, %v437_v63  ;;  %v571_v2 = vrot.slane %v2114_v0, 4 }
  0xb0   : > { %1561 = vmatprep.subr.mxu0 %v1815_v8  ;;  %v570_v3 = vrot.slane %v2120_v1, 4 }
  0xb1   : > { %1562 = vmatpush3.msra.mxu0 %v2120_v1 }
  0xb2   : > { %v2126_v4 = vpop.permute.xlu0 %565  ;;  %1563 = vmatprep.subr.mxu0 %v1815_v8  ;;  %v572_v9 = vsel %vm383_vm7, %v570_v3, %v571_v2 }
  0xb3   : > { %v563_v5 = vpop.permute.xlu1 %562  ;;  %1573 = vmatpush3.msk.msra.mxu1 %vm383_vm7, %v2126_v4  ;;  %v691_v49 = vrot.slane %v2126_v4, 4 }
  0xb4   : > { %1574 = vmatprep.subr.mxu1 %v1815_v8  ;;  %v2134_v33 = vsel %vm383_vm7, %v1981_v48, %v563_v5 }
  0xb5   : > { %1575 = vmatpush3.msra.mxu1 %v2134_v33  ;;  %v690_v50 = vrot.slane %v2134_v33, 4 }
  0xb6   : > { %1576 = vmatprep.subr.mxu1 %v1815_v8  ;;  %v411_v7 = vpop.permute.xlu0 %410 }
  0xb7   : > { %v408_v10 = vpop.permute.xlu1 %407  ;;  %v445_v11 = vrot.slane %v411_v7, 4  ;;  %1577 = vmatpush3.msra.mxu1 %v572_v9  ;;  %v575_v12 = vsel %vm383_vm7, %v411_v7, %v570_v3  ;;  %v695_v54 = vsel %vm383_vm7, %v2114_v0, %v690_v50 }
  0xb8   : > { %v2142_v13 = vsel %vm383_vm7, %v2005_v6, %v408_v10  ;;  %1578 = vmatprep.subr.mxu1 %v1815_v8 }
  0xb9   : > { %v444_v48 = vrot.slane %v2142_v13, 4  ;;  %1579 = vmatpush3.msra.mxu1 %v575_v12 }
  0xba   : > { %1580 = vmatprep.subr.mxu1 %v1815_v8  ;;  %v683_v15 = vpop.permute.xlu0 %682 }
  0xbb   : > { %v2152_v16 = vpop.permute.xlu1 %800  ;;  %v446_v6 = vsel %vm383_vm7, %v444_v48, %v445_v11  ;;  %1581 = vmatpush3.msra.mxu1 %v2142_v13  ;;  %v2160_v18 = vsel %vm383_vm7, %v2041_v43, %v683_v15 }
  0xbc   : > { %1564 = vmatpush3.msra.mxu0 %v446_v6  ;;  %1583 = vmatmul.mubr.msk.f32.vlgmr.msra.gmra.mxu1 %vm455_vm8, %v2149_v14  ;;  %v805_v20 = vrot.slane %v2160_v18, 4  ;;  %v925_v56 = vrot.slane %v2152_v16, 4 }
  0xbd   : > { %1598 = vmatprep.subr.mxu1 %v1815_v8  ;;  %1608 = vmatprep.mubr.msk.f32.mxu1 %vm1818_vm6, %v1815_v8 }
  0xbe   : > { %1599 = vmatpush3.msk.msra.mxu1 %vm383_vm7, %v2152_v16  ;;  %v2169_v19 = vpop.permute.xlu0 %685  ;;  %1565 = vmatprep.subr.mxu0 %v1815_v8  ;;  %v810_v27 = vsel %vm383_vm7, %v2126_v4, %v805_v20 }
  0xbf   : > { %v798_v43 = vpop.permute.xlu1 %797  ;;  %v806_v22 = vrot.slane %v2169_v19, 4  ;;  %1600 = vmatprep.subr.mxu1 %v1815_v8 }
  0xc0   : > { %v2177_v23 = vsel %vm383_vm7, %v2014_v17, %v798_v43 }
  0xc1   : > { %1601 = vmatpush3.msra.mxu1 %v2177_v23  ;;  %v807_v24 = vsel %vm383_vm7, %v805_v20, %v806_v22  ;;  %v924_v55 = vrot.slane %v2177_v23, 4 }
  0xc2   : > { %1602 = vmatprep.subr.mxu1 %v1815_v8  ;;  %v917_v25 = vpop.permute.xlu0 %916 }
  0xc3   : > { %v2182_v26 = vpop.permute.xlu1 %1034  ;;  %1603 = vmatpush3.msra.mxu1 %v807_v24  ;;  %v2192_v28 = vsel %vm383_vm7, %v2066_v21, %v917_v25  ;;  %v926_v57 = vsel %vm383_vm7, %v924_v55, %v925_v56  ;;  %v929_v58 = vsel %vm383_vm7, %v2169_v19, %v924_v55 }
  0xc4   : > { %1604 = vmatprep.subr.mxu1 %v1815_v8  ;;  %v1039_v31 = vrot.slane %v2192_v28, 4  ;;  %v1158_v60 = vrot.slane %v2182_v26, 4 }
  0xc5   : > { %1605 = vmatpush3.msra.mxu1 %v810_v27 }
  0xc6   : > { %1606 = vmatprep.subr.mxu1 %v1815_v8  ;;  %v2188_v17 = vpop.permute.xlu0 %919  ;;  %v1044_v37 = vsel %vm383_vm7, %v2152_v16, %v1039_v31 }
  0xc7   : > { %v1032_v29 = vpop.permute.xlu1 %1031  ;;  %1607 = vmatpush3.msra.mxu1 %v2134_v33  ;;  %v1040_v30 = vrot.slane %v2188_v17, 4 }
  0xc8   : > { %1609 = vmatmul.mubr.msk.f32.vlgmr.msra.gmra.mxu1 %vm455_vm8, %v2149_v14  ;;  %1624 = vmatprep.subr.mxu1 %v1815_v8  ;;  %v2206_v21 = vsel %vm383_vm7, %v2047_v53, %v1032_v29 }
  0xc9   : > { %1625 = vmatpush3.msk.msra.mxu1 %vm383_vm7, %v2182_v26  ;;  %1634 = vmatprep.mubr.msk.f32.mxu1 %vm1818_vm6, %v1815_v8  ;;  %v1041_v35 = vsel %vm383_vm7, %v1039_v31, %v1040_v30 }
  0xca   : > { %1626 = vmatprep.subr.mxu1 %v1815_v8  ;;  %v1151_v32 = vpop.permute.xlu0 %1150 }
  0xcb   : > { %1627 = vmatpush3.msra.mxu1 %v2206_v21  ;;  %v1268_v34 = vpop.permute.xlu1 %1267  ;;  %v2220_v38 = vsel %vm383_vm7, %v2094_v52, %v1151_v32  ;;  %v692_v52 = vsel %vm383_vm7, %v690_v50, %v691_v49 }
  0xcc   : > { %1628 = vmatprep.subr.mxu1 %v1815_v8  ;;  %v1271_v46 = vrot.slane %v2220_v38, 4 }
  0xcd   : > { %1629 = vmatpush3.msra.mxu1 %v1041_v35 }
  0xce   : > { %1630 = vmatprep.subr.mxu1 %v1815_v8  ;;  %v2213_v36 = vpop.permute.xlu0 %1153  ;;  %v1276_v51 = vsel %vm383_vm7, %v2182_v26, %v1271_v46 }
  0xcf   : > { %1631 = vmatpush3.msra.mxu1 %v1044_v37  ;;  %v1265_v53 = vpop.permute.xlu1 %1264  ;;  %v1272_v39 = vrot.slane %v2213_v36, 4 }
  0xd0   : > { %1632 = vmatprep.subr.mxu1 %v1815_v8  ;;  %v1269_v40 = vsel %vm383_vm7, %v2081_v41, %v1265_v53 }
  0xd1   : > { %1633 = vmatpush3.msra.mxu1 %v2177_v23  ;;  %v1273_v47 = vsel %vm383_vm7, %v1271_v46, %v1272_v39 }
  0xd2   : > { %1635 = vmatmul.mubr.msk.f32.vlgmr.msra.gmra.mxu1 %vm455_vm8, %v2149_v14  ;;  %1650 = vmatprep.subr.mxu1 %v1815_v8  ;;  %v381_v42 = vpop.permute.xlu0 %380 }
  0xd3   : > { %1651 = vmatpush3.msk.msra.mxu1 %vm383_vm7, %v1268_v34  ;;  %v378_v44 = vpop.permute.xlu1 %377  ;;  %v449_v45 = vsel %vm383_vm7, %v381_v42, %v444_v48  ;;  %1660 = vmatprep.mubr.msk.f32.mxu1 %vm1818_vm6, %v1815_v8 }
  0xd4   : > { %1652 = vmatprep.subr.mxu1 %v1815_v8  ;;  %1566 = vmatpush3.msra.mxu0 %v449_v45  ;;  %v384_v41 = vsel %vm383_vm7, %v2105_v59, %v378_v44  ;;  %v1157_v59 = vrot.slane %v2206_v21, 4 }
  0xd5   : > { %1653 = vmatpush3.msra.mxu1 %v1269_v40  ;;  %1567 = vmatprep.subr.mxu0 %v1815_v8 }
  0xd6   : > { %1654 = vmatprep.subr.mxu1 %v1815_v8  ;;  %1568 = vmatpush3.msra.mxu0 %v384_v41  ;;  %v1159_v61 = vsel %vm383_vm7, %v1157_v59, %v1158_v60  ;;  %v1162_v62 = vsel %vm383_vm7, %v2188_v17, %v1157_v59 }
  0xd7   : > { %1655 = vmatpush3.msra.mxu1 %v1273_v47  ;;  %1570 = vmatmul.mubr.msk.f32.vlgmr.msra.gmra.mxu0 %vm455_vm8, %v2149_v14 }
  0xd8   : > { %1585 = vmatprep.subr.mxu0 %v1815_v8  ;;  %1656 = vmatprep.subr.mxu1 %v1815_v8 }
  0xd9   : > { %1586 = vmatpush3.msk.msra.mxu0 %vm383_vm7, %v2169_v19  ;;  %1657 = vmatpush3.msra.mxu1 %v1276_v51 }
  0xda   : > { %1587 = vmatprep.subr.mxu0 %v1815_v8  ;;  %1658 = vmatprep.subr.mxu1 %v1815_v8 }
  0xdb   : > { %1588 = vmatpush3.msra.mxu0 %v2160_v18  ;;  %1659 = vmatpush3.msra.mxu1 %v2206_v21 }
  0xdc   : > { %1589 = vmatprep.subr.mxu0 %v1815_v8  ;;  %1661 = vmatmul.mubr.msk.f32.vlgmr.msra.gmra.mxu1 %vm455_vm8, %v2149_v14 }
  0xdd   : > { %1590 = vmatpush3.msra.mxu0 %v692_v52  ;;  %1595 = vmatprep.mubr.msk.f32.mxu0 %vm1818_vm6, %v1815_v8 }
  0xde   : > { %1591 = vmatprep.subr.mxu0 %v1815_v8 }
  0xdf   : > { %1592 = vmatpush3.msra.mxu0 %v695_v54  ;;  %v453_v63 = vpop.permute.xlu0 %452 }
  0xe0   : > { %1593 = vmatprep.subr.mxu0 %v1815_v8 }
  0xe1   : > { %1594 = vmatpush3.msra.mxu0 %v2120_v1 }
  0xe2   : > { %1596 = vmatmul.mubr.msk.f32.vlgmr.msra.gmra.mxu0 %vm455_vm8, %v2149_v14  ;;  %1611 = vmatprep.subr.mxu0 %v1815_v8 }
  0xe3   : > { %1612 = vmatpush3.msk.msra.mxu0 %vm383_vm7, %v2188_v17  ;;  %1621 = vmatprep.mubr.msk.f32.mxu0 %vm1818_vm6, %v1815_v8 }
  0xe4   : > { %1613 = vmatprep.subr.mxu0 %v1815_v8 }
  0xe5   : > { %1614 = vmatpush3.msra.mxu0 %v2192_v28 }
  0xe6   : > { %1615 = vmatprep.subr.mxu0 %v1815_v8 }
  0xe7   : > { %1616 = vmatpush3.msra.mxu0 %v926_v57 }
  0xe8   : > { %1617 = vmatprep.subr.mxu0 %v1815_v8 }
  0xe9   : > { %1618 = vmatpush3.msra.mxu0 %v929_v58 }
  0xea   : > { %1619 = vmatprep.subr.mxu0 %v1815_v8 }
  0xeb   : > { %1620 = vmatpush3.msra.mxu0 %v2160_v18 }
  0xec   : > { %1622 = vmatmul.mubr.msk.f32.vlgmr.msra.gmra.mxu0 %vm455_vm8, %v2149_v14  ;;  %1637 = vmatprep.subr.mxu0 %v1815_v8 }
  0xed   : > { %1638 = vmatpush3.msk.msra.mxu0 %vm383_vm7, %v2213_v36  ;;  %1647 = vmatprep.mubr.msk.f32.mxu0 %vm1818_vm6, %v1815_v8 }
  0xee   : > { %1639 = vmatprep.subr.mxu0 %v1815_v8 }
  0xef   : > { %1640 = vmatpush3.msra.mxu0 %v2220_v38 }
  0xf0   : > { %1641 = vmatprep.subr.mxu0 %v1815_v8 }
  0xf1   : > { %1642 = vmatpush3.msra.mxu0 %v1159_v61 }
  0xf2   : > { %1643 = vmatprep.subr.mxu0 %v1815_v8 }
  0xf3   : > { %1644 = vmatpush3.msra.mxu0 %v1162_v62 }
  0xf4   : > { %1645 = vmatprep.subr.mxu0 %v1815_v8 }
  0xf5   : > { %1646 = vmatpush3.msra.mxu0 %v2192_v28 }
  0xf6   : > { %1648 = vmatmul.mubr.msk.f32.vlgmr.msra.gmra.mxu0 %vm455_vm8, %v2149_v14 }
 0x17c   : > { %v644_v0 = vpop.f32.mrf.mxu1 }
 0x17d   : > { %v645_v1 = vadd.f32 %v644_v0, %v453_v63 }
 0x17e   : > { %v1584_v2 = vpop.f32.mrf.mxu1 }
 0x17f   : > { %v649_v3 = vrot.slane %v645_v1, 4 }
 0x181   : > { %650 = vrot.lane.b32.xlu1 %v649_v3, %s1820_s29 }
 0x188   : > { %v879_v4 = vpop.f32.mrf.mxu1 }
 0x189   : > { %v880_v5 = vadd.f32 %v879_v4, %v453_v63 }
 0x18a   : > { %v1610_v33 = vpop.f32.mrf.mxu1 }
 0x18b   : > { %v884_v7 = vrot.slane %v880_v5, 4 }
 0x18d   : > { %885 = vrot.lane.b32.xlu1 %v884_v7, %s1820_s29 }
 0x192   : > { %v1113_v8 = vpop.f32.mrf.mxu1 }
 0x193   : > { %v1114_v9 = vadd.f32 %v1113_v8, %v453_v63 }
 0x194   : > { %v1636_v10 = vpop.f32.mrf.mxu1 }
 0x195   : > { %v1118_v11 = vrot.slane %v1114_v9, 4 }
 0x197   : > { %1119 = vrot.lane.b32.xlu0 %v1118_v11, %s1820_s29  ;;  %v527_v12 = vpop.f32.mrf.mxu0 }
 0x198   : > { %v528_v13 = vadd.f32 %v527_v12, %v453_v63 }
 0x199   : > { %v1571_v48 = vpop.f32.mrf.mxu0 }
 0x19a   : > { %v532_v14 = vrot.slane %v528_v13, 4 }
 0x19c   : > { %v1345_v15 = vpop.f32.mrf.mxu1  ;;  %533 = vrot.lane.b32.xlu0 %v532_v14, %s1820_s29 }
 0x19d   : > { %v1346_v16 = vadd.f32 %v1345_v15, %v453_v63 }
 0x19e   : > { %v1662_v6 = vpop.f32.mrf.mxu1 }
 0x19f   : > { %v1350_v18 = vrot.slane %v1346_v16, 4 }
 0x1a1   : > { %1351 = vrot.lane.b32.xlu1 %v1350_v18, %s1820_s29 }
 0x1a2   : > { %v764_v19 = vpop.f32.mrf.mxu0 }
 0x1a3   : > { %v765_v20 = vadd.f32 %v764_v19, %v453_v63 }
 0x1a4   : > { %v1597_v43 = vpop.f32.mrf.mxu0 }
 0x1a5   : > { %v769_v22 = vrot.slane %v765_v20, 4 }
 0x1a7   : > { %770 = vrot.lane.b32.xlu1 %v769_v22, %s1820_s29 }
 0x1ac   : > { %v998_v23 = vpop.f32.mrf.mxu0 }
 0x1ad   : > { %v999_v24 = vadd.f32 %v998_v23, %v453_v63 }
 0x1ae   : > { %v1623_v25 = vpop.f32.mrf.mxu0 }
 0x1af   : > { %v1003_v26 = vrot.slane %v999_v24, 4 }
 0x1b1   : > { %1004 = vrot.lane.b32.xlu0 %v1003_v26, %s1820_s29 }
 0x1b6   : > { %v1231_v27 = vpop.f32.mrf.mxu0 }
 0x1b7   : > { %v1232_v17 = vadd.f32 %v1231_v27, %v453_v63 }
 0x1b8   : > { %v1649_v28 = vpop.f32.mrf.mxu0 }
 0x1b9   : > { %v1236_v29 = vrot.slane %v1232_v17, 4 }
 0x1bb   : > { %1237 = vrot.lane.b32.xlu1 %v1236_v29, %s1820_s29 }
 0x1f3   : > { %v651_v30 = vpop.permute.xlu1 %650 }
 0x1f4   : > { %v653_v31 = vsel %vm536_vm9, %v645_v1, %v651_v30 }
 0x1f5   : > { %655 = vrot.lane.b32.xlu0 %v653_v31, %s1821_s24 }
 0x1ff   : > { %v886_v21 = vpop.permute.xlu1 %885 }
 0x200   : > { %v888_v32 = vsel %vm536_vm9, %v880_v5, %v886_v21 }
 0x201   : > { %890 = vrot.lane.b32.xlu1 %v888_v32, %s1821_s24 }
 0x209   : > { %v1120_v34 = vpop.permute.xlu0 %1119 }
 0x20a   : > { %v1122_v35 = vsel %vm536_vm9, %v1114_v9, %v1120_v34 }
 0x20b   : > { %1124 = vrot.lane.b32.xlu0 %v1122_v35, %s1821_s24 }
 0x20e   : > { %v534_v36 = vpop.permute.xlu0 %533 }
 0x20f   : > { %v537_v37 = vsel %vm536_vm9, %v528_v13, %v534_v36 }
 0x210   : > { %539 = vst.msk [vmem:[%s345_s27] sm:$0xf] %vm538_vm10, %v537_v37 }
 0x213   : > { %v1352_v53 = vpop.permute.xlu1 %1351 }
 0x214   : > { %v1354_v38 = vsel %vm536_vm9, %v1346_v16, %v1352_v53 }
 0x215   : > { %1356 = vrot.lane.b32.xlu1 %v1354_v38, %s1821_s24 }
 0x219   : > { %v771_v39 = vpop.permute.xlu1 %770 }
 0x21a   : > { %v773_v40 = vsel %vm536_vm9, %v765_v20, %v771_v39 }
 0x21b   : > { %774 = vst.msk [vmem:[%s345_s27 + $0x4] sm:$0xf] %vm538_vm10, %v773_v40 }
 0x223   : > { %v1005_v42 = vpop.permute.xlu0 %1004 }
 0x224   : > { %v1007_v44 = vsel %vm536_vm9, %v999_v24, %v1005_v42 }
 0x225   : > { %1008 = vst.msk [vmem:[%s345_s27 + $0x8] sm:$0xf] %vm538_vm10, %v1007_v44 }
 0x22d   : > { %v1238_v45 = vpop.permute.xlu1 %1237 }
 0x22e   : > { %v1240_v46 = vsel %vm536_vm9, %v1232_v17, %v1238_v45 }
 0x22f   : > { %1241 = vst.msk [vmem:[%s345_s27 + $0xc] sm:$0xf] %vm538_vm10, %v1240_v46 }
 0x267   : > { %v656_v41 = vpop.permute.xlu0 %655 }
 0x268   : > { %659 = vst.msk [vmem:[%s345_s27] sm:$0xf] %vm658_vm11, %v656_v41 }
 0x273   : > { %v891_v47 = vpop.permute.xlu1 %890 }
 0x274   : > { %893 = vst.msk [vmem:[%s345_s27 + $0x4] sm:$0xf] %vm658_vm11, %v891_v47 }
 0x27d   : > { %v1125_v49 = vpop.permute.xlu0 %1124 }
 0x27e   : > { %1127 = vst.msk [vmem:[%s345_s27 + $0x8] sm:$0xf] %vm658_vm11, %v1125_v49 }
 0x287   : > { %v1357_v50 = vpop.permute.xlu1 %1356 }
 0x288   : > { %1359 = vst.msk [vmem:[%s345_s27 + $0xc] sm:$0xf] %vm658_vm11, %v1357_v50 }
 0x289 PF: > { %s14_s23 = sadd.s32 1, %s1813_s23   ;;  %s2361_s15 = smov %s1785_s16 }
 0x28a   : > { %p11_p1 = scmp.ge.s32.totalorder %s14_s23, 6   ;;  %s2362_s16 = smov %s1927_s12 }
 0x28b   : > { %s2363_s17 = smov %s1793_s18  ;;  %s2364_s18 = smov %s1924_s11 }
 0x28c   : > { %s2365_s19 = smov %s1805_s21  ;;  %s2366_s20 = smov %s1809_s22 }
 0x28d   : > { %s2367_s21 = smov %s1897_s26  ;;  %s2368_s22 = smov %s2372_s25 }
 0x28e   :  { %13 = sbr.rel (!%p11_p1) target bundleno = 5 (0x5), region = 155 }

</bundles_post_ra>
